<compile_context>
chip_gen: v7x
topology: tpu7x:2x2x1
jax: 0.10.0
libtpu: 0.0.40
codegen_flags: <defaults>
</compile_context>

<pallas_src>
import math

import jax
import jax.numpy as jnp
from jax import lax
from jax.experimental import pallas as pl

# Keep f32 matmul precision everywhere (reference uses @ / einsum).
jax.config.update("jax_default_matmul_precision", "float32")

# ----------------------------- problem sizes --------------------------------
B = 2      # batch
S = 8      # sequence length
D = 32     # model dim ("size")
H = 4      # attention heads
DK = D // H
DFF = 64   # feed-forward hidden dim
EPS = 1e-6
NEG_INF = -1e9
BS = B * S
HBS = H * BS

# contract the LAST dim of both operands (i.e. A @ B^T) without a transpose op
_DN_NT = (((1,), (1,)), ((), ()))
_PREC = lax.Precision.HIGHEST


# ------------------------------ Pallas kernel -------------------------------
def transformer_layer_kernel(x_ref, bias_ref, hmask_ref, w_ref, v_ref, out_ref):
    # Whole problem in one invocation; everything is already in VMEM.
    x = x_ref[...]            # (BS, D) f32
    bias = bias_ref[...]      # (BS, HBS) additive attention bias (0 or -1e9)
    hmask = hmask_ref[...]    # (HBS, D) block-diagonal head mask (0/1)

    # ---- packed vector params (v_pack: (3, 128)) ----
    ln1_a = v_ref[0:1, 0:D]
    ln1_b = v_ref[0:1, D:2 * D]
    ln2_a = v_ref[0:1, 2 * D:3 * D]
    ln2_b = v_ref[0:1, 3 * D:4 * D]
    b_qkv = v_ref[1:2, 0:3 * D]          # bq already scaled by 1/sqrt(DK)
    b_o = v_ref[1:2, 3 * D:4 * D]
    b_1 = v_ref[2:3, 0:DFF]
    b_2 = v_ref[2:3, DFF:DFF + D]

    # ---- packed weights (w_pack: (D, 4D + 2*DFF) = (32, 256)) ----
    w_qkv = w_ref[:, 0:3 * D]                        # (D, 3D), Wq pre-scaled
    w_o = w_ref[:, 3 * D:4 * D]                      # (D, D)
    w_1 = w_ref[:, 4 * D:4 * D + DFF]                # (D, DFF)
    w_2t = w_ref[:, 4 * D + DFF:4 * D + 2 * DFF]     # (D, DFF) == W2^T

    def layer_norm(h, a, b):
        # torch: a * (h - mean) / (std + eps) + b, std unbiased (divide by D-1)
        mean = jnp.mean(h, axis=-1, keepdims=True)
        diff = h - mean
        var = jnp.sum(diff * diff, axis=-1, keepdims=True) * (1.0 / (D - 1))
        inv = pl.reciprocal(jnp.sqrt(var) + EPS, approx=False)   # exact
        return a * diff * inv + b

    # ---- sublayer 0: x + self_attn(LN(x), LN(x), LN(x), cond) ----
    ln1 = layer_norm(x, ln1_a, ln1_b)
    # fused Q/K/V projection: one MXU launch
    qkv = jnp.dot(ln1, w_qkv, precision=_PREC,
                  preferred_element_type=jnp.float32) + b_qkv     # (BS, 3D)
    q = qkv[:, 0:D]                     # (BS, D), pre-scaled by 1/sqrt(DK)
    k = qkv[:, D:2 * D]
    v = qkv[:, 2 * D:3 * D]

    # Replicate K / V across heads on the sublane axis and mask block-diagonal
    # -> all heads' attention collapses to 3 matmuls (scores, numer, denom).
    k_rep = jnp.concatenate([k] * H, axis=0) * hmask              # (HBS, D)
    v_rep = jnp.concatenate([v] * H, axis=0) * hmask              # (HBS, D)

    s = lax.dot_general(q, k_rep, dimension_numbers=_DN_NT,
                        precision=_PREC,
                        preferred_element_type=jnp.float32)       # (BS, HBS)
    s = s + bias                                  # causal + batch-block mask
    s = s - jnp.max(s, axis=-1, keepdims=True)    # per-row constant: cancels
    p = jnp.exp(s)
    numer = jnp.dot(p, v_rep, precision=_PREC,
                    preferred_element_type=jnp.float32)           # (BS, D)
    denom = jnp.dot(p, hmask, precision=_PREC,
                    preferred_element_type=jnp.float32)           # (BS, D) per-head sums
    attn = numer * pl.reciprocal(denom, approx=False)
    attn = jnp.dot(attn, w_o, precision=_PREC,
                   preferred_element_type=jnp.float32) + b_o

    x1 = x + attn                            # dropout(p=0) == identity

    # ---- sublayer 1: x + feed_forward(LN(x)) ----
    ln2 = layer_norm(x1, ln2_a, ln2_b)
    hidden = jnp.dot(ln2, w_1, precision=_PREC,
                     preferred_element_type=jnp.float32) + b_1
    hidden = jnp.maximum(hidden, 0.0)        # ReLU
    ff = lax.dot_general(hidden, w_2t, dimension_numbers=_DN_NT,
                         precision=_PREC,
                         preferred_element_type=jnp.float32) + b_2

    out_ref[...] = (x1 + ff).astype(out_ref.dtype)


# --------------------------- one-time packing --------------------------------
def pack_params(params):
    """Pack the 18 tiny parameters into two lane-dense slabs (run once)."""
    scale = 1.0 / math.sqrt(DK)
    w_pack = jnp.concatenate(
        [params["wq"] * scale, params["wk"], params["wv"], params["wo"],
         params["w1"], params["w2"].T], axis=1)                   # (32, 256)

    v0 = jnp.concatenate([params["ln1_a"], params["ln1_b"],
                          params["ln2_a"], params["ln2_b"]], axis=1)      # (1, 128)
    v1 = jnp.concatenate([params["bq"] * scale, params["bk"],
                          params["bv"], params["bo"]], axis=1)            # (1, 128)
    v2 = jnp.concatenate([params["b1"], params["b2"],
                          jnp.zeros((1, D), jnp.float32)], axis=1)        # (1, 128)
    v_pack = jnp.concatenate([v0, v1, v2], axis=0)                        # (3, 128)
    return w_pack, v_pack


def pack_attention_bias(cond):
    """(B, S, S) mask -> (BS, HBS) additive bias, replicated per head (run once)."""
    bias_b = jnp.where(cond > 0, 0.0, NEG_INF).astype(jnp.float32)        # (B, S, S)
    same = jnp.eye(B, dtype=jnp.float32)[:, None, :, None]                # (B,1,B,1)
    attn_bias = jnp.where(same > 0, bias_b[:, :, None, :], NEG_INF)       # (B,S,B,S)
    attn_bias = attn_bias.reshape(BS, BS)
    return jnp.tile(attn_bias, (1, H))                                    # (BS, HBS)


def make_head_mask():
    """(HBS, D) 0/1 mask: row block h keeps only head-h feature columns."""
    row_head = lax.broadcasted_iota(jnp.int32, (HBS, D), 0) // BS
    col_head = lax.broadcasted_iota(jnp.int32, (HBS, D), 1) // DK
    return (row_head == col_head).astype(jnp.float32)


# ------------------------------ wrapper --------------------------------------
@jax.jit
def transformer_layer(x, bias_full, head_mask, w_pack, v_pack):
    """x: (B, S, D) f32; everything else pre-packed (see pack_* helpers)."""
    x2d = x.reshape(BS, D)
    out = pl.pallas_call(
        transformer_layer_kernel,
        out_shape=jax.ShapeDtypeStruct((BS, D), jnp.float32),
        in_specs=[
            pl.BlockSpec((BS, D), lambda: (0, 0)),               # x (flattened tokens)
            pl.BlockSpec((BS, HBS), lambda: (0, 0)),             # additive attention bias
            pl.BlockSpec((HBS, D), lambda: (0, 0)),              # block-diag head mask
            pl.BlockSpec((D, 4 * D + 2 * DFF), lambda: (0, 0)),  # packed weights
            pl.BlockSpec((3, 128), lambda: (0, 0)),              # packed vectors
        ],
        out_specs=pl.BlockSpec((BS, D), lambda: (0, 0)),
    )(x2d, bias_full, head_mask, w_pack, v_pack)
    return out.reshape(B, S, D)


# --------------------------- pure-JAX reference ------------------------------
def reference(x, cond, p):
    def layer_norm(h, a, b):
        mean = jnp.mean(h, axis=-1, keepdims=True)
        diff = h - mean
        var = jnp.sum(diff * diff, axis=-1, keepdims=True) / (h.shape[-1] - 1)
        return a * diff / (jnp.sqrt(var) + EPS) + b

    ln1 = layer_norm(x, p["ln1_a"][0], p["ln1_b"][0])
    q = ln1 @ p["wq"] + p["bq"][0]
    k = ln1 @ p["wk"] + p["bk"][0]
    v = ln1 @ p["wv"] + p["bv"][0]
    q = q.reshape(B, S, H, DK).transpose(0, 2, 1, 3)
    k = k.reshape(B, S, H, DK).transpose(0, 2, 1, 3)
    v = v.reshape(B, S, H, DK).transpose(0, 2, 1, 3)
    scores = jnp.einsum("bhqd,bhkd->bhqk", q, k) / math.sqrt(DK)
    scores = jnp.where(cond[:, None, :, :] > 0, scores, NEG_INF)
    w = jax.nn.softmax(scores, axis=-1)
    attn = jnp.einsum("bhqk,bhkd->bhqd", w, v).transpose(0, 2, 1, 3).reshape(B, S, D)
    attn = attn @ p["wo"] + p["bo"][0]
    x1 = x + attn
    ln2 = layer_norm(x1, p["ln2_a"][0], p["ln2_b"][0])
    ff = jnp.maximum(ln2 @ p["w1"] + p["b1"][0], 0.0) @ p["w2"] + p["b2"][0]
    return x1 + ff


# ------------------------------ main ------------------------------------------
if __name__ == "__main__":
    key = jax.random.PRNGKey(0)
    ks = jax.random.split(key, 12)

    def init(k, shape, fan_in):
        return jax.random.normal(k, shape, jnp.float32) / math.sqrt(fan_in)

    params = {
        "ln1_a": jnp.ones((1, D), jnp.float32),
        "ln1_b": jnp.zeros((1, D), jnp.float32),
        "ln2_a": jnp.ones((1, D), jnp.float32),
        "ln2_b": jnp.zeros((1, D), jnp.float32),
        "wq": init(ks[0], (D, D), D), "bq": jnp.zeros((1, D), jnp.float32),
        "wk": init(ks[1], (D, D), D), "bk": jnp.zeros((1, D), jnp.float32),
        "wv": init(ks[2], (D, D), D), "bv": jnp.zeros((1, D), jnp.float32),
        "wo": init(ks[3], (D, D), D), "bo": jnp.zeros((1, D), jnp.float32),
        "w1": init(ks[4], (D, DFF), D), "b1": jnp.zeros((1, DFF), jnp.float32),
        "w2": init(ks[5], (DFF, D), DFF), "b2": jnp.zeros((1, D), jnp.float32),
    }

    x = jax.random.normal(ks[6], (B, S, D), jnp.float32)
    # causal attention mask, same for every batch element (general cond supported)
    causal = jnp.tril(jnp.ones((S, S), jnp.float32))
    cond = jnp.broadcast_to(causal, (B, S, S))

    # one-time packing, hoisted out of the per-call path
    w_pack, v_pack = pack_params(params)
    bias_full = pack_attention_bias(cond)
    head_mask = make_head_mask()

    out = transformer_layer(x, bias_full, head_mask, w_pack, v_pack)
    out = jax.block_until_ready(out)

    ref = reference(x, cond, params)
    assert out.shape == (B, S, D)
    err = jnp.max(jnp.abs(out - ref))
    assert jnp.allclose(out, ref, atol=2e-3, rtol=2e-3), f"max abs err {err}"

    print("KERNEL_OK")
</pallas_src>

<mosaic_0001>
module attributes {stable_mosaic.version = 11 : i64} {
  func.func @transformer_layer_kernel(%arg0: memref<16x32xf32, #tpu.memory_space<vmem>>, %arg1: memref<16x64xf32, #tpu.memory_space<vmem>>, %arg2: memref<64x32xf32, #tpu.memory_space<vmem>>, %arg3: memref<32x256xf32, #tpu.memory_space<vmem>>, %arg4: memref<3x128xf32, #tpu.memory_space<vmem>>, %arg5: memref<16x32xf32, #tpu.memory_space<vmem>>) attributes {dimension_semantics = [], scalar_prefetch = 0 : i64, scratch_operands = 0 : i64, tpu.core_type = #tpu.core_type<tc>} {
    %c0 = arith.constant 0 : index
    %c0_0 = arith.constant 0 : index
    %0 = vector.load %arg0[%c0, %c0_0] : memref<16x32xf32, #tpu.memory_space<vmem>>, vector<16x32xf32>
    %c0_1 = arith.constant 0 : index
    %c0_2 = arith.constant 0 : index
    %1 = vector.load %arg1[%c0_1, %c0_2] : memref<16x64xf32, #tpu.memory_space<vmem>>, vector<16x64xf32>
    %c0_3 = arith.constant 0 : index
    %c0_4 = arith.constant 0 : index
    %2 = vector.load %arg2[%c0_3, %c0_4] : memref<64x32xf32, #tpu.memory_space<vmem>>, vector<64x32xf32>
    %c0_5 = arith.constant 0 : index
    %c0_6 = arith.constant 0 : index
    %3 = vector.load %arg4[%c0_5, %c0_6] : memref<3x128xf32, #tpu.memory_space<vmem>>, vector<1x32xf32>
    %c0_7 = arith.constant 0 : index
    %c32 = arith.constant 32 : index
    %4 = vector.load %arg4[%c0_7, %c32] : memref<3x128xf32, #tpu.memory_space<vmem>>, vector<1x32xf32>
    %c0_8 = arith.constant 0 : index
    %c64 = arith.constant 64 : index
    %5 = vector.load %arg4[%c0_8, %c64] : memref<3x128xf32, #tpu.memory_space<vmem>>, vector<1x32xf32>
    %c0_9 = arith.constant 0 : index
    %c96 = arith.constant 96 : index
    %6 = vector.load %arg4[%c0_9, %c96] : memref<3x128xf32, #tpu.memory_space<vmem>>, vector<1x32xf32>
    %c1 = arith.constant 1 : index
    %c0_10 = arith.constant 0 : index
    %7 = vector.load %arg4[%c1, %c0_10] : memref<3x128xf32, #tpu.memory_space<vmem>>, vector<1x96xf32>
    %c1_11 = arith.constant 1 : index
    %c96_12 = arith.constant 96 : index
    %8 = vector.load %arg4[%c1_11, %c96_12] : memref<3x128xf32, #tpu.memory_space<vmem>>, vector<1x32xf32>
    %c2 = arith.constant 2 : index
    %c0_13 = arith.constant 0 : index
    %9 = vector.load %arg4[%c2, %c0_13] : memref<3x128xf32, #tpu.memory_space<vmem>>, vector<1x64xf32>
    %c2_14 = arith.constant 2 : index
    %c64_15 = arith.constant 64 : index
    %10 = vector.load %arg4[%c2_14, %c64_15] : memref<3x128xf32, #tpu.memory_space<vmem>>, vector<1x32xf32>
    %c0_16 = arith.constant 0 : index
    %c0_17 = arith.constant 0 : index
    %11 = vector.load %arg3[%c0_16, %c0_17] : memref<32x256xf32, #tpu.memory_space<vmem>>, vector<32x96xf32>
    %c0_18 = arith.constant 0 : index
    %c96_19 = arith.constant 96 : index
    %12 = vector.load %arg3[%c0_18, %c96_19] : memref<32x256xf32, #tpu.memory_space<vmem>>, vector<32x32xf32>
    %c0_20 = arith.constant 0 : index
    %c128 = arith.constant 128 : index
    %13 = vector.load %arg3[%c0_20, %c128] : memref<32x256xf32, #tpu.memory_space<vmem>>, vector<32x64xf32>
    %c0_21 = arith.constant 0 : index
    %c192 = arith.constant 192 : index
    %14 = vector.load %arg3[%c0_21, %c192] : memref<32x256xf32, #tpu.memory_space<vmem>>, vector<32x64xf32>
    %cst = arith.constant dense<0.000000e+00> : vector<16xf32>
    %15 = vector.multi_reduction <add>, %0, %cst [1] : vector<16x32xf32> to vector<16xf32>
    %16 = vector.shape_cast %15 : vector<16xf32> to vector<16x1xf32>
    %cst_22 = arith.constant 3.200000e+01 : f32
    %17 = vector.broadcast %cst_22 : f32 to vector<16x1xf32>
    %18 = arith.divf %16, %17 : vector<16x1xf32>
    %19 = vector.broadcast %18 : vector<16x1xf32> to vector<16x32xf32>
    %20 = arith.subf %0, %19 : vector<16x32xf32>
    %21 = arith.mulf %20, %20 : vector<16x32xf32>
    %cst_23 = arith.constant dense<0.000000e+00> : vector<16xf32>
    %22 = vector.multi_reduction <add>, %21, %cst_23 [1] : vector<16x32xf32> to vector<16xf32>
    %23 = vector.shape_cast %22 : vector<16xf32> to vector<16x1xf32>
    %cst_24 = arith.constant 0.0322580636 : f32
    %24 = vector.broadcast %cst_24 : f32 to vector<16x1xf32>
    %25 = arith.mulf %23, %24 : vector<16x1xf32>
    %26 = math.sqrt %25 : vector<16x1xf32>
    %cst_25 = arith.constant 9.99999997E-7 : f32
    %27 = vector.broadcast %cst_25 : f32 to vector<16x1xf32>
    %28 = arith.addf %26, %27 : vector<16x1xf32>
    %29 = tpu.reciprocal %28 : vector<16x1xf32> -> vector<16x1xf32>
    %30 = vector.broadcast %3 : vector<1x32xf32> to vector<16x32xf32>
    %31 = arith.mulf %30, %20 : vector<16x32xf32>
    %32 = vector.broadcast %29 : vector<16x1xf32> to vector<16x32xf32>
    %33 = arith.mulf %31, %32 : vector<16x32xf32>
    %34 = vector.broadcast %4 : vector<1x32xf32> to vector<16x32xf32>
    %35 = arith.addf %33, %34 : vector<16x32xf32>
    %cst_26 = arith.constant dense<0.000000e+00> : vector<16x96xf32>
    %36 = tpu.matmul %35, %11, %cst_26 {dimension_numbers = #tpu.dot_dimension_numbers<[1], [0], [0], [1], [0, 0, 1, 1], [], []>, precision = #tpu.contract_precision<fp32>} : vector<16x32xf32>, vector<32x96xf32>, vector<16x96xf32> -> vector<16x96xf32>
    %37 = vector.broadcast %7 : vector<1x96xf32> to vector<16x96xf32>
    %38 = arith.addf %36, %37 : vector<16x96xf32>
    %39 = vector.extract_strided_slice %38 {offsets = [0, 0], sizes = [16, 32], strides = [1, 1]} : vector<16x96xf32> to vector<16x32xf32>
    %40 = vector.extract_strided_slice %38 {offsets = [0, 32], sizes = [16, 32], strides = [1, 1]} : vector<16x96xf32> to vector<16x32xf32>
    %41 = vector.extract_strided_slice %38 {offsets = [0, 64], sizes = [16, 32], strides = [1, 1]} : vector<16x96xf32> to vector<16x32xf32>
    %42 = tpu.concatenate %40, %40, %40, %40 in 0 : vector<16x32xf32>, vector<16x32xf32>, vector<16x32xf32>, vector<16x32xf32> -> vector<64x32xf32>
    %43 = arith.mulf %42, %2 : vector<64x32xf32>
    %44 = tpu.concatenate %41, %41, %41, %41 in 0 : vector<16x32xf32>, vector<16x32xf32>, vector<16x32xf32>, vector<16x32xf32> -> vector<64x32xf32>
    %45 = arith.mulf %44, %2 : vector<64x32xf32>
    %cst_27 = arith.constant dense<0.000000e+00> : vector<16x64xf32>
    %46 = tpu.matmul %39, %43, %cst_27 {dimension_numbers = #tpu.dot_dimension_numbers<[1], [1], [0], [0], [0, 0, 1, 0], [], []>, precision = #tpu.contract_precision<fp32>} : vector<16x32xf32>, vector<64x32xf32>, vector<16x64xf32> -> vector<16x64xf32>
    %47 = arith.addf %46, %1 : vector<16x64xf32>
    %cst_28 = arith.constant dense<0xFF800000> : vector<16xf32>
    %48 = vector.multi_reduction <maximumf>, %47, %cst_28 [1] : vector<16x64xf32> to vector<16xf32>
    %49 = vector.shape_cast %48 : vector<16xf32> to vector<16x1xf32>
    %50 = vector.broadcast %49 : vector<16x1xf32> to vector<16x64xf32>
    %51 = arith.subf %47, %50 : vector<16x64xf32>
    %52 = math.exp %51 : vector<16x64xf32>
    %cst_29 = arith.constant dense<0.000000e+00> : vector<16x32xf32>
    %53 = tpu.matmul %52, %45, %cst_29 {dimension_numbers = #tpu.dot_dimension_numbers<[1], [0], [0], [1], [0, 0, 1, 1], [], []>, precision = #tpu.contract_precision<fp32>} : vector<16x64xf32>, vector<64x32xf32>, vector<16x32xf32> -> vector<16x32xf32>
    %cst_30 = arith.constant dense<0.000000e+00> : vector<16x32xf32>
    %54 = tpu.matmul %52, %2, %cst_30 {dimension_numbers = #tpu.dot_dimension_numbers<[1], [0], [0], [1], [0, 0, 1, 1], [], []>, precision = #tpu.contract_precision<fp32>} : vector<16x64xf32>, vector<64x32xf32>, vector<16x32xf32> -> vector<16x32xf32>
    %55 = tpu.reciprocal %54 : vector<16x32xf32> -> vector<16x32xf32>
    %56 = arith.mulf %53, %55 : vector<16x32xf32>
    %cst_31 = arith.constant dense<0.000000e+00> : vector<16x32xf32>
    %57 = tpu.matmul %56, %12, %cst_31 {dimension_numbers = #tpu.dot_dimension_numbers<[1], [0], [0], [1], [0, 0, 1, 1], [], []>, precision = #tpu.contract_precision<fp32>} : vector<16x32xf32>, vector<32x32xf32>, vector<16x32xf32> -> vector<16x32xf32>
    %58 = vector.broadcast %8 : vector<1x32xf32> to vector<16x32xf32>
    %59 = arith.addf %57, %58 : vector<16x32xf32>
    %60 = arith.addf %0, %59 : vector<16x32xf32>
    %cst_32 = arith.constant dense<0.000000e+00> : vector<16xf32>
    %61 = vector.multi_reduction <add>, %60, %cst_32 [1] : vector<16x32xf32> to vector<16xf32>
    %62 = vector.shape_cast %61 : vector<16xf32> to vector<16x1xf32>
    %cst_33 = arith.constant 3.200000e+01 : f32
    %63 = vector.broadcast %cst_33 : f32 to vector<16x1xf32>
    %64 = arith.divf %62, %63 : vector<16x1xf32>
    %65 = vector.broadcast %64 : vector<16x1xf32> to vector<16x32xf32>
    %66 = arith.subf %60, %65 : vector<16x32xf32>
    %67 = arith.mulf %66, %66 : vector<16x32xf32>
    %cst_34 = arith.constant dense<0.000000e+00> : vector<16xf32>
    %68 = vector.multi_reduction <add>, %67, %cst_34 [1] : vector<16x32xf32> to vector<16xf32>
    %69 = vector.shape_cast %68 : vector<16xf32> to vector<16x1xf32>
    %cst_35 = arith.constant 0.0322580636 : f32
    %70 = vector.broadcast %cst_35 : f32 to vector<16x1xf32>
    %71 = arith.mulf %69, %70 : vector<16x1xf32>
    %72 = math.sqrt %71 : vector<16x1xf32>
    %cst_36 = arith.constant 9.99999997E-7 : f32
    %73 = vector.broadcast %cst_36 : f32 to vector<16x1xf32>
    %74 = arith.addf %72, %73 : vector<16x1xf32>
    %75 = tpu.reciprocal %74 : vector<16x1xf32> -> vector<16x1xf32>
    %76 = vector.broadcast %5 : vector<1x32xf32> to vector<16x32xf32>
    %77 = arith.mulf %76, %66 : vector<16x32xf32>
    %78 = vector.broadcast %75 : vector<16x1xf32> to vector<16x32xf32>
    %79 = arith.mulf %77, %78 : vector<16x32xf32>
    %80 = vector.broadcast %6 : vector<1x32xf32> to vector<16x32xf32>
    %81 = arith.addf %79, %80 : vector<16x32xf32>
    %cst_37 = arith.constant dense<0.000000e+00> : vector<16x64xf32>
    %82 = tpu.matmul %81, %13, %cst_37 {dimension_numbers = #tpu.dot_dimension_numbers<[1], [0], [0], [1], [0, 0, 1, 1], [], []>, precision = #tpu.contract_precision<fp32>} : vector<16x32xf32>, vector<32x64xf32>, vector<16x64xf32> -> vector<16x64xf32>
    %83 = vector.broadcast %9 : vector<1x64xf32> to vector<16x64xf32>
    %84 = arith.addf %82, %83 : vector<16x64xf32>
    %cst_38 = arith.constant 0.000000e+00 : f32
    %85 = vector.broadcast %cst_38 : f32 to vector<16x64xf32>
    %86 = arith.maximumf %84, %85 : vector<16x64xf32>
    %cst_39 = arith.constant dense<0.000000e+00> : vector<16x32xf32>
    %87 = tpu.matmul %86, %14, %cst_39 {dimension_numbers = #tpu.dot_dimension_numbers<[1], [1], [0], [0], [0, 0, 1, 0], [], []>, precision = #tpu.contract_precision<fp32>} : vector<16x64xf32>, vector<32x64xf32>, vector<16x32xf32> -> vector<16x32xf32>
    %88 = vector.broadcast %10 : vector<1x32xf32> to vector<16x32xf32>
    %89 = arith.addf %87, %88 : vector<16x32xf32>
    %90 = arith.addf %60, %89 : vector<16x32xf32>
    %c0_40 = arith.constant 0 : index
    %c0_41 = arith.constant 0 : index
    %91 = vector.load %arg5[%c0_40, %c0_41] : memref<16x32xf32, #tpu.memory_space<vmem>>, vector<16x32xf32>
    tpu.vector_store %arg5[%c0_40, %c0_41], %90 {strides = array<i32>} : memref<16x32xf32, #tpu.memory_space<vmem>>, vector<16x32xf32>,
    return
  }
}

</mosaic_0001>

<bundles_post_ra>
// kernel: transformer_layer.1
= control target key start
LH: loop header
LB: loop body
LE: loop exit
PB: predicated region body
PF: predicated region fallthrough
CT: control target
= control target key end

     0   :  { %vm44_vm0 = vcmask 261120   ;;  %s6578_s0 = inlined_call_operand.vmem [shape: f32[16,32], index: 0, kind: input, shape index: {}]   ;;  %s6579_s1 = inlined_call_operand.vmem [shape: f32[16,64], index: 1, kind: input, shape index: {}]   ;;  %s6580_s2 = inlined_call_operand.vmem [shape: f32[64,32], index: 2, kind: input, shape index: {}]   ;;  %s6581_s3 = inlined_call_operand.vmem [shape: f32[32,256], index: 3, kind: input, shape index: {}]   ;;  %s6582_s4 = inlined_call_operand.vmem [shape: f32[3,128], index: 4, kind: input, shape index: {}]   ;;  %s6583_s5 = inlined_call_operand.hbm [shape: f32[16,32], index: 5, kind: output, shape index: {}]  }
   0x1   :  { %v21_v0 = vld [vmem:[%s6578_s0] sm:$0xff]  ;;  %v22_v1 = vld [vmem:[%s6578_s0 + $0x8] sm:$0xff] }
   0x2   :  { %v45_v2 = vsel %vm44_vm0, %v21_v0, 0.0 }
   0x3   :  { %10 = vsyncpa [#allocation3], 0  ;;  %46 = vadd.xlane.f32.xlu0 %v45_v2  ;;  %v48_v3 = vsel %vm44_vm0, %v22_v1, 0.0  ;;  %v5876_v4 = vld [vmem:[%s6582_s4] ss:$0 sm:$0xff]  ;;  %s5829_s24 = smov 96  }
   0x4   :  { %v5893_v15 = vld [vmem:[%s6581_s3] sm:$0xff]  ;;  %v5898_v16 = vld [vmem:[%s6581_s3 + $0x10] sm:$0xff]  ;;  %v5943_v48 = vld [vmem:[%s6580_s2 + $0x18] sm:$0xff]  ;;  %s5830_s12 = smov 32   ;;  %s5831_s27 = smov 64   ;;  %vm1334_vm5 = vcmask 523264  }
   0x5   :  { %v109_v17 = vand.u32 4294901760, %v5893_v15  ;;  %v112_v18 = vand.u32 4294901760, %v5898_v16  ;;  %v5907_v21 = vld [vmem:[%s6581_s3 + $0x20] sm:$0xff]  ;;  %v5912_v22 = vld [vmem:[%s6581_s3 + $0x30] sm:$0xff]  ;;  %v5952_v49 = vld [vmem:[%s6580_s2 + $0x8] sm:$0xff] }
   0x6   :  { %v115_v25 = vand.u32 4294901760, %v5907_v21  ;;  %v118_v26 = vand.u32 4294901760, %v5912_v22  ;;  %v5938_v47 = vld [vmem:[%s6580_s2] sm:$0xff]  ;;  %v5957_v50 = vld [vmem:[%s6580_s2 + $0x28] sm:$0xff]  ;;  %v5966_v51 = vld [vmem:[%s6580_s2 + $0x10] sm:$0xff] }
   0x7   :  { %49 = vadd.xlane.f32.xlu0 %v48_v3  ;;  %v199_v19 = vsub.f32 %v5893_v15, %v109_v17  ;;  %v206_v20 = vsub.f32 %v5898_v16, %v112_v18  ;;  %v5918_v41 = vpack.c.bf16 %v112_v18, %v109_v17  ;;  %v5971_v52 = vld [vmem:[%s6580_s2 + $0x38] sm:$0xff]  ;;  %v5980_v53 = vld [vmem:[%s6580_s2 + $0x20] sm:$0xff]  ;;  %v5987_v54 = vld [vmem:[%s6580_s2 + $0x30] sm:$0xff] }
   0x8   :  { %v213_v29 = vsub.f32 %v5907_v21, %v115_v25  ;;  %v220_v30 = vsub.f32 %v5912_v22, %v118_v26  ;;  %v5920_v42 = vpack.c.bf16 %v118_v26, %v115_v25 }
   0x9   :  { %v200_v23 = vand.u32 4294901760, %v199_v19  ;;  %v207_v24 = vand.u32 4294901760, %v206_v20  ;;  %v5922_v43 = vpack.c.bf16 %v206_v20, %v199_v19  ;;  %5213 = vmatprep.subr.bf16.mxu1 %v5918_v41 }
   0xa   :  { %v214_v33 = vand.u32 4294901760, %v213_v29  ;;  %v221_v34 = vand.u32 4294901760, %v220_v30  ;;  %5215 = vmatpush3.bf16.msra.mxu1 %v5918_v41  ;;  %v5927_v44 = vpack.c.bf16 %v220_v30, %v213_v29 }
   0xb   :  { %v201_v27 = vsub.f32 %v199_v19, %v200_v23  ;;  %v208_v28 = vsub.f32 %v206_v20, %v207_v24  ;;  %5217 = vmatprep.subr.bf16.mxu1 %v5920_v42  ;;  %v5931_v45 = vpack.c.bf16 %v207_v24, %v200_v23 }
   0xc   :  { %v215_v36 = vsub.f32 %v213_v29, %v214_v33  ;;  %v222_v37 = vsub.f32 %v220_v30, %v221_v34  ;;  %v5933_v46 = vpack.c.bf16 %v221_v34, %v214_v33 }
   0xd   :  { %v202_v31 = vand.u32 4294901760, %v201_v27  ;;  %v209_v32 = vand.u32 4294901760, %v208_v28 }
   0xe   :  { %v216_v38 = vand.u32 4294901760, %v215_v36  ;;  %v223_v39 = vand.u32 4294901760, %v222_v37  ;;  %5219 = vmatpush3.bf16.msra.mxu1 %v5920_v42  ;;  %v6019_v36 = vld [vmem:[%s6582_s4 + $0x1] ss:$0 sm:$0xff] }
   0xf   :  { %v5220_v35 = vpack.c.bf16 %v209_v32, %v202_v31 }
  0x10   :  { %v5224_v40 = vpack.c.bf16 %v223_v39, %v216_v38 }
  0x11   :  { %5221 = vmatprep.subr.bf16.mxu0 %v5220_v35 }
  0x12   :  { %5223 = vmatpush3.bf16.msra.mxu0 %v5220_v35 }
  0x13   :  { %5225 = vmatprep.subr.bf16.mxu0 %v5224_v40 }
  0x16   :  { %5227 = vmatpush3.bf16.msra.mxu0 %v5224_v40 }
  0x17   :  { %5229 = vmatprep.subr.bf16.mxu0 %v5922_v43 }
  0x1d   :  { %93 = vrot.lane.b32.xlu0 %v5876_v4, %s5829_s24 }
  0x21   :  { %650 = vrot.lane.b32.xlu0 %v5943_v48, %s5830_s12 }
  0x25   :  { %654 = vrot.lane.b32.xlu0 %v5957_v50, %s5830_s12 }
  0x29   :  { %658 = vrot.lane.b32.xlu0 %v5971_v52, %s5830_s12 }
  0x90   :  { %v47_v5 = vpop.xlane.xlu0 %46 }
  0x91   :  { %v52_v6 = vmul.f32 0.03125, %v47_v5 }
  0x93   :  { %v5880_v7 = vsub.f32 %v21_v0, %v52_v6 }
  0x94   :  { %v50_v8 = vpop.xlane.xlu0 %49 }
  0x95   :  { %v53_v9 = vmul.f32 0.03125, %v50_v8  ;;  %v56_v10 = vmul.f32 %v5880_v7, %v5880_v7 }
  0x97   :  { %v5884_v11 = vsub.f32 %v22_v1, %v53_v9  ;;  %v58_v12 = vsel %vm44_vm0, %v56_v10, 0.0  ;;  %v88_v9 = vmul.f32 %v5876_v4, %v5880_v7 }
  0x98   :  { %59 = vadd.xlane.f32.xlu1 %v58_v12  ;;  %v5993_v12 = vpop.permute.xlu0 %93 }
  0x99   :  { %v57_v13 = vmul.f32 %v5884_v11, %v5884_v11 }
  0x9b   :  { %v61_v14 = vsel %vm44_vm0, %v57_v13, 0.0 }
  0x9c   :  { %62 = vadd.xlane.f32.xlu1 %v61_v14  ;;  %v89_v14 = vmul.f32 %v5876_v4, %v5884_v11  ;;  %v651_v39 = vpop.permute.xlu0 %650 }
  0xad   :  { %644 = vrot.lane.b32.xlu1 %v5938_v47, %s5830_s12 }
  0xb1   :  { %646 = vrot.lane.b32.xlu1 %v5952_v49, %s5830_s12 }
  0xb5   :  { %648 = vrot.lane.b32.xlu1 %v5966_v51, %s5830_s12 }
  0xb9   :  { %652 = vrot.lane.b32.xlu1 %v5980_v53, %s5830_s12 }
  0xbd   :  { %656 = vrot.lane.b32.xlu1 %v5987_v54, %s5830_s12 }
 0x125   :  { %v60_v55 = vpop.xlane.xlu1 %59 }
 0x126   :  { %v64_v56 = vmul.f32 0.032258064, %v60_v55 }
 0x128   :  { %5778 = vrsqrt.f32 %v64_v56  ;;  %vm68_vm1 = vcmp.eq.f32.partialorder %v64_v56, inf  ;;  %v71_v61 = vand.u32 2147483648, %v64_v56  ;;  %vm70_vm2 = vcmp.eq.f32.partialorder %v64_v56, 0.0 }
 0x129   :  { %v63_v57 = vpop.xlane.xlu1 %62 }
 0x12a   :  { %v65_v58 = vmul.f32 0.032258064, %v63_v57  ;;  %v655_v57 = vpop.permute.xlu0 %654 }
 0x12c   :  { %5780 = vrsqrt.f32 %v65_v58  ;;  %vm75_vm3 = vcmp.eq.f32.partialorder %v65_v58, inf  ;;  %v78_v3 = vand.u32 2147483648, %v65_v58  ;;  %vm77_vm4 = vcmp.eq.f32.partialorder %v65_v58, 0.0 }
 0x12d   :  { %v645_v34 = vpop.permute.xlu1 %644 }
 0x131   :  { %v647_v35 = vpop.permute.xlu1 %646 }
 0x132   :  { %v5779_v59 = vpop.eup %5778 }
 0x133   :  { %v67_v60 = vmul.f32 %v5779_v59, %v64_v56 }
 0x135   :  { %v69_v62 = vsel %vm68_vm1, %v64_v56, %v67_v60 }
 0x136   :  { %v5781_v63 = vpop.eup %5780  ;;  %v72_v0 = vsel %vm70_vm2, %v71_v61, %v69_v62 }
 0x137   :  { %v74_v1 = vmul.f32 %v5781_v63, %v65_v58  ;;  %v80_v2 = vadd.f32 1e-06, %v72_v0 }
 0x139   :  { %v76_v5 = vsel %vm75_vm3, %v65_v58, %v74_v1  ;;  %5782 = vrcp.f32 %v80_v2  ;;  %v659_v1 = vpop.permute.xlu0 %658 }
 0x13a   :  { %v79_v6 = vsel %vm77_vm4, %v78_v3, %v76_v5 }
 0x13b   :  { %v81_v8 = vadd.f32 1e-06, %v79_v6 }
 0x13d   :  { %5784 = vrcp.f32 %v81_v8 }
 0x143   :  { %v5783_v10 = vpop.eup %5782 }
 0x144   :  { %v90_v13 = vmul.f32 %v5783_v10, %v88_v9 }
 0x146   :  { %v96_v17 = vadd.f32 %v5993_v12, %v90_v13 }
 0x147   :  { %v5785_v18 = vpop.eup %5784 }
 0x148   :  { %v91_v19 = vmul.f32 %v5785_v18, %v89_v14  ;;  %v103_v20 = vsel %vm44_vm0, %v96_v17, 0 }
 0x149   :  { %v177_v23 = vand.u32 4294901760, %v103_v20 }
 0x14a   :  { %v97_v24 = vadd.f32 %v5993_v12, %v91_v19 }
 0x14b   :  { %4625 = vmatprep.mubr.f32.mxu0 %v177_v23  ;;  %v178_v25 = vsub.f32 %v103_v20, %v177_v23 }
 0x14c   :  { %v106_v7 = vsel %vm44_vm0, %v97_v24, 0 }
 0x14d   :  { %v187_v26 = vand.u32 4294901760, %v106_v7  ;;  %v179_v27 = vand.u32 4294901760, %v178_v25 }
 0x14f   :  { %4626 = vmatmul.mubr.f32.vlgmr.msra.gmra.mrb[0].mxu0 %v187_v26  ;;  %v180_v28 = vsub.f32 %v178_v25, %v179_v27  ;;  %v188_v29 = vsub.f32 %v106_v7, %v187_v26 }
 0x150   :  { %5231 = vmatpush3.bf16.msra.mxu0 %v5922_v43  ;;  %4636 = vmatprep.mubr.f32.mxu0 %v178_v25 }
 0x151   :  { %5233 = vmatprep.subr.bf16.mxu0 %v5927_v44  ;;  %v181_v4 = vand.u32 4294901760, %v180_v28  ;;  %v189_v11 = vand.u32 4294901760, %v188_v29 }
 0x153   :  { %4614 = vmatprep.mubr.f32.mxu1 %v181_v4  ;;  %v190_v30 = vsub.f32 %v188_v29, %v189_v11 }
 0x154   :  { %5235 = vmatpush3.bf16.msra.mxu0 %v5927_v44 }
 0x155   :  { %5237 = vmatprep.subr.bf16.mxu0 %v5918_v41  ;;  %v191_v31 = vand.u32 4294901760, %v190_v30 }
 0x157   :  { %4615 = vmatmul.mubr.f32.vlgmr.msra.gmra.mrb[0].mxu1 %v191_v31  ;;  %4637 = vmatmul.mubr.f32.vlgmr.msra.gmra.mrb[0].mxu0 %v188_v29 }
 0x158   :  { %5239 = vmatpush3.bf16.msra.mxu0 %v5918_v41  ;;  %4647 = vmatprep.mubr.f32.mxu0 %v179_v27 }
 0x159   :  { %5241 = vmatprep.subr.bf16.mxu0 %v5920_v42 }
 0x15c   :  { %5243 = vmatpush3.bf16.msra.mxu0 %v5920_v42 }
 0x15d   :  { %5245 = vmatprep.subr.bf16.mxu0 %v5931_v45 }
 0x15f   :  { %4648 = vmatmul.mubr.f32.vlgmr.msra.gmra.mrb[0].mxu0 %v189_v11 }
 0x160   :  { %5247 = vmatpush3.bf16.msra.mxu0 %v5931_v45  ;;  %4658 = vmatprep.mubr.f32.mxu0 %v177_v23 }
 0x161   :  { %5249 = vmatprep.subr.bf16.mxu0 %v5933_v46 }
 0x164   :  { %5251 = vmatpush3.bf16.msra.mxu0 %v5933_v46 }
 0x165   :  { %5253 = vmatprep.subr.bf16.mxu0 %v5918_v41 }
 0x167   :  { %4659 = vmatmul.mubr.f32.vlgmr.msra.gmra.mrb[0].mxu0 %v187_v26 }
 0x168   :  { %5255 = vmatpush3.bf16.msra.mxu0 %v5918_v41  ;;  %4669 = vmatprep.mubr.f32.mxu0 %v177_v23  ;;  %v649_v41 = vpop.permute.xlu1 %648 }
 0x169   :  { %5257 = vmatprep.subr.bf16.mxu0 %v5920_v42 }
 0x16c   :  { %5259 = vmatpush3.bf16.msra.mxu0 %v5920_v42  ;;  %v653_v58 = vpop.permute.xlu1 %652 }
 0x16f   :  { %4670 = vmatmul.mubr.f32.vlgmr.msra.gmra.mrb[0].mxu0 %v187_v26 }
 0x170   :  { %v657_v3 = vpop.permute.xlu1 %656 }
 0x22a   :  { %v4616_v32 = vpop.f32.mrb[0].mxu1 }
 0x22b   :  { %v183_v33 = vpop.f32.mrb[1].mxu1  ;;  %v194_v37 = vadd.f32 %v4616_v32, %v6019_v36 }
 0x22c   :  { %v184_v38 = vadd.f32 %v6019_v36, %v183_v33 }
 0x242   :  { %v4671_v40 = vpop.f32.mrb[0].mxu0 }
 0x243   :  { %v6023_v43 = vadd.f32 %v4671_v40, %v194_v37  ;;  %v626_v42 = vpop.f32.mrb[1].mxu0 }
 0x244   :  { %v6025_v44 = vadd.f32 %v626_v42, %v184_v38 }
 0x245   :  { %v669_v45 = vmul.f32 %v6023_v43, %v647_v35  ;;  %v671_v59 = vmul.f32 %v6023_v43, %v651_v39  ;;  %v673_v63 = vmul.f32 %v6023_v43, %v655_v57  ;;  %v675_v6 = vmul.f32 %v6023_v43, %v659_v1 }
 0x246   :  { %v668_v46 = vmul.f32 %v6025_v44, %v645_v34  ;;  %v733_v55 = vsel %vm44_vm0, %v6025_v44, 0  ;;  %v670_v61 = vmul.f32 %v6025_v44, %v649_v41  ;;  %v672_v2 = vmul.f32 %v6025_v44, %v653_v58 }
 0x247   :  { %718 = vrot.lane.b32.xlu0 %v669_v45, %s5829_s24  ;;  %v6032_v56 = vand.u32 4294901760, %v733_v55  ;;  %v674_v8 = vmul.f32 %v6025_v44, %v657_v3 }
 0x248   :  { %716 = vrot.lane.b32.xlu1 %v668_v46, %s5829_s24 }
 0x249   :  { %4707 = vmatprep.mubr.f32.mxu1 %v6032_v56  ;;  %v6038_v60 = vsub.f32 %v733_v55, %v6032_v56 }
 0x24b   :  { %722 = vrot.lane.b32.xlu0 %v671_v59, %s5829_s24  ;;  %v829_v62 = vand.u32 4294901760, %v6038_v60 }
 0x24c   :  { %720 = vrot.lane.b32.xlu1 %v670_v61, %s5829_s24 }
 0x24d   :  { %v830_v0 = vsub.f32 %v6038_v60, %v829_v62 }
 0x24f   :  { %726 = vrot.lane.b32.xlu0 %v673_v63, %s5829_s24  ;;  %v831_v5 = vand.u32 4294901760, %v830_v0 }
 0x250   :  { %724 = vrot.lane.b32.xlu1 %v672_v2, %s5829_s24 }
 0x251   :  { %4688 = vmatprep.mubr.f32.mxu0 %v831_v5 }
 0x253   :  { %730 = vrot.lane.b32.xlu0 %v675_v6, %s5829_s24 }
 0x254   :  { %728 = vrot.lane.b32.xlu1 %v674_v8, %s5829_s24 }
 0x257   :  { %678 = vrot.lane.b32.xlu0 %v5952_v49, %s5831_s27 }
 0x258   :  { %676 = vrot.lane.b32.xlu1 %v5938_v47, %s5831_s27 }
 0x25b   :  { %682 = vrot.lane.b32.xlu0 %v5943_v48, %s5831_s27 }
 0x25c   :  { %680 = vrot.lane.b32.xlu1 %v5966_v51, %s5831_s27 }
 0x25f   :  { %686 = vrot.lane.b32.xlu0 %v5957_v50, %s5831_s27 }
 0x260   :  { %684 = vrot.lane.b32.xlu1 %v5980_v53, %s5831_s27 }
 0x263   :  { %690 = vrot.lane.b32.xlu0 %v5971_v52, %s5831_s27 }
 0x264   :  { %688 = vrot.lane.b32.xlu1 %v5987_v54, %s5831_s27 }
 0x2b9   :  { %v719_v9 = vpop.permute.xlu0 %718 }
 0x2ba   :  { %v740_v10 = vsel %vm44_vm0, %v719_v9, 0  ;;  %v717_v13 = vpop.permute.xlu1 %716 }
 0x2bb   :  { %v758_v14 = vand.u32 4294901760, %v740_v10  ;;  %v738_v17 = vsel %vm44_vm0, %v717_v13, 0 }
 0x2bc   :  { %v755_v18 = vand.u32 4294901760, %v738_v17 }
 0x2bd   :  { %v6073_v19 = vsub.f32 %v740_v10, %v758_v14  ;;  %v723_v20 = vpop.permute.xlu0 %722 }
 0x2be   :  { %v6075_v23 = vpack.c.bf16 %v758_v14, %v755_v18  ;;  %v6077_v24 = vsub.f32 %v738_v17, %v755_v18  ;;  %v744_v25 = vsel %vm44_vm0, %v723_v20, 0  ;;  %v721_v7 = vpop.permute.xlu1 %720 }
 0x2bf   :  { %v857_v26 = vand.u32 4294901760, %v6073_v19  ;;  %v764_v27 = vand.u32 4294901760, %v744_v25  ;;  %v742_v28 = vsel %vm44_vm0, %v721_v7, 0 }
 0x2c0   :  { %v850_v29 = vand.u32 4294901760, %v6077_v24  ;;  %v761_v4 = vand.u32 4294901760, %v742_v28  ;;  %5261 = vmatprep.subr.bf16.mxu0 %v6075_v23 }
 0x2c1   :  { %v858_v11 = vsub.f32 %v6073_v19, %v857_v26  ;;  %v6085_v30 = vsub.f32 %v744_v25, %v764_v27  ;;  %5263 = vmatpush3.bf16.xpose.msra.mxu0 %v6075_v23  ;;  %v727_v31 = vpop.permute.xlu0 %726 }
 0x2c2   :  { %v851_v32 = vsub.f32 %v6077_v24, %v850_v29  ;;  %v6089_v33 = vpack.c.bf16 %v764_v27, %v761_v4  ;;  %v6091_v34 = vsub.f32 %v742_v28, %v761_v4  ;;  %v748_v35 = vsel %vm44_vm0, %v727_v31, 0  ;;  %v725_v37 = vpop.permute.xlu1 %724 }
 0x2c3   :  { %v871_v38 = vand.u32 4294901760, %v6085_v30  ;;  %v770_v39 = vand.u32 4294901760, %v748_v35  ;;  %v746_v40 = vsel %vm44_vm0, %v725_v37, 0  ;;  %v859_v41 = vand.u32 4294901760, %v858_v11 }
 0x2c4   :  { %v864_v42 = vand.u32 4294901760, %v6091_v34  ;;  %v767_v45 = vand.u32 4294901760, %v746_v40  ;;  %5265 = vmatprep.subr.bf16.mxu0 %v6089_v33  ;;  %v852_v46 = vand.u32 4294901760, %v851_v32  ;;  %v6101_v59 = vpack.c.bf16 %v857_v26, %v850_v29 }
 0x2c5   :  { %v872_v55 = vsub.f32 %v6085_v30, %v871_v38  ;;  %v6099_v57 = vsub.f32 %v748_v35, %v770_v39  ;;  %v731_v58 = vpop.permute.xlu0 %730  ;;  %v736_v4 = vsel %vm44_vm0, %v6023_v43, 0 }
 0x2c6   :  { %v865_v61 = vsub.f32 %v6091_v34, %v864_v42  ;;  %v6104_v63 = vsub.f32 %v746_v40, %v767_v45  ;;  %v752_v0 = vsel %vm44_vm0, %v731_v58, 0  ;;  %v729_v1 = vpop.permute.xlu1 %728  ;;  %v5276_v6 = vpack.c.bf16 %v859_v41, %v852_v46 }
 0x2c7   :  { %v885_v2 = vand.u32 4294901760, %v6099_v57  ;;  %v776_v3 = vand.u32 4294901760, %v752_v0  ;;  %v750_v5 = vsel %vm44_vm0, %v729_v1, 0  ;;  %v873_v13 = vand.u32 4294901760, %v872_v55 }
 0x2c8   :  { %v878_v8 = vand.u32 4294901760, %v6104_v63  ;;  %v773_v9 = vand.u32 4294901760, %v750_v5  ;;  %v866_v10 = vand.u32 4294901760, %v865_v61  ;;  %v6111_v17 = vpack.c.bf16 %v770_v39, %v767_v45  ;;  %5277 = vmatprep.subr.bf16.mxu1 %v5276_v6 }
 0x2c9   :  { %v886_v14 = vsub.f32 %v6099_v57, %v885_v2  ;;  %v6113_v18 = vsub.f32 %v752_v0, %v776_v3  ;;  %5267 = vmatpush3.bf16.xpose.msra.mxu0 %v6089_v33  ;;  %v679_v20 = vpop.permute.xlu0 %678  ;;  %5279 = vmatpush3.bf16.xpose.msra.mxu1 %v5276_v6  ;;  %v6123_v31 = vpack.c.bf16 %v871_v38, %v864_v42  ;;  %v6128_v45 = vand.u32 4294901760, %v736_v4 }
 0x2ca   :  { %v879_v25 = vsub.f32 %v6104_v63, %v878_v8  ;;  %v891_v7 = vsub.f32 %v750_v5, %v773_v9  ;;  %v701_v26 = vmul.f32 %v6023_v43, %v679_v20  ;;  %v677_v27 = vpop.permute.xlu1 %676  ;;  %5269 = vmatprep.subr.bf16.mxu0 %v6111_v17  ;;  %v5280_v29 = vpack.c.bf16 %v873_v13, %v866_v10 }
 0x2cb   :  { %v899_v28 = vand.u32 4294901760, %v6113_v18  ;;  %v887_v37 = vand.u32 4294901760, %v886_v14  ;;  %v6125_v39 = vpack.c.bf16 %v885_v2, %v878_v8  ;;  %v6133_v58 = vpack.c.bf16 %v776_v3, %v773_v9 }
 0x2cc   :  { %v892_v11 = vand.u32 4294901760, %v891_v7  ;;  %1357 = vrot.lane.b32.xlu1 %v701_v26, %s5831_s27  ;;  %5281 = vmatprep.subr.bf16.mxu1 %v5280_v29  ;;  %v880_v35 = vand.u32 4294901760, %v879_v25  ;;  %v838_v3 = vsub.f32 %v736_v4, %v6128_v45  ;;  %v700_v9 = vmul.f32 %v6025_v44, %v677_v27 }
 0x2cd   :  { %v683_v32 = vpop.permute.xlu0 %682  ;;  %v900_v38 = vsub.f32 %v6113_v18, %v899_v28  ;;  %v5292_v25 = vpack.c.bf16 %v6073_v19, %v6077_v24  ;;  %v5296_v26 = vpack.c.bf16 %v6085_v30, %v6091_v34  ;;  %v5300_v27 = vpack.c.bf16 %v6099_v57, %v6104_v63 }
 0x2ce   :  { %v703_v40 = vmul.f32 %v6023_v43, %v683_v32  ;;  %v681_v41 = vpop.permute.xlu1 %680  ;;  %v6130_v46 = vpack.c.bf16 %v899_v28, %v892_v11  ;;  %v893_v42 = vsub.f32 %v891_v7, %v892_v11  ;;  %v5284_v0 = vpack.c.bf16 %v887_v37, %v880_v35 }
 0x2cf   :  { %v702_v55 = vmul.f32 %v6025_v44, %v681_v41  ;;  %v901_v8 = vand.u32 4294901760, %v900_v38  ;;  %v839_v10 = vand.u32 4294901760, %v838_v3  ;;  %v5304_v28 = vpack.c.bf16 %v6113_v18, %v891_v7 }
 0x2d0   :  { %1361 = vrot.lane.b32.xlu0 %v703_v40, %s5831_s27  ;;  %v894_v6 = vand.u32 4294901760, %v893_v42 }
 0x2d1   :  { %5271 = vmatpush3.bf16.xpose.msra.mxu0 %v6111_v17  ;;  %1359 = vrot.lane.b32.xlu1 %v702_v55, %s5831_s27  ;;  %v687_v61 = vpop.permute.xlu0 %686  ;;  %v840_v14 = vsub.f32 %v838_v3, %v839_v10 }
 0x2d2   :  { %5283 = vmatpush3.bf16.xpose.msra.mxu1 %v5280_v29  ;;  %v705_v1 = vmul.f32 %v6023_v43, %v687_v61  ;;  %v685_v2 = vpop.permute.xlu1 %684  ;;  %5273 = vmatprep.subr.bf16.mxu0 %v6133_v58  ;;  %v5288_v13 = vpack.c.bf16 %v901_v8, %v894_v6 }
 0x2d3   :  { %v704_v5 = vmul.f32 %v6025_v44, %v685_v2  ;;  %5285 = vmatprep.subr.bf16.mxu1 %v5284_v0  ;;  %v841_v20 = vand.u32 4294901760, %v840_v14 }
 0x2d4   :  { %1365 = vrot.lane.b32.xlu0 %v705_v1, %s5831_s27 }
 0x2d5   :  { %1363 = vrot.lane.b32.xlu1 %v704_v5, %s5831_s27 }
 0x2d8   :  { %1355 = vrot.lane.b32.xlu0 %v700_v9, %s5831_s27 }
 0x2d9   :  { %5275 = vmatpush3.bf16.xpose.msra.mxu0 %v6133_v58 }
 0x2da   :  { %5287 = vmatpush3.bf16.xpose.msra.mxu1 %v5284_v0 }
 0x2db   :  { %5289 = vmatprep.subr.bf16.mxu1 %v5288_v13 }
 0x2e0   :  { %4689 = vmatmul.mubr.f32.vlgmr.msra.gmra.mrb[2].mxu0 %v841_v20 }
 0x2e2   :  { %5291 = vmatpush3.bf16.xpose.msra.mxu1 %v5288_v13 }
 0x2e3   :  { %5293 = vmatprep.subr.bf16.mxu1 %v5292_v25 }
 0x2e9   :  { %4708 = vmatmul.mubr.f32.vlgmr.msra.gmra.mrb[2].mxu1 %v6128_v45 }
 0x2ea   :  { %5295 = vmatpush3.bf16.xpose.msra.mxu1 %v5292_v25  ;;  %4726 = vmatprep.mubr.f32.mxu1 %v6038_v60  ;;  %v6173_v60 = vpop.permute.xlu1 %688 }
 0x2eb   :  { %5297 = vmatprep.subr.bf16.mxu1 %v5296_v26 }
 0x2f2   :  { %5299 = vmatpush3.bf16.xpose.msra.mxu1 %v5296_v26 }
 0x2f3   :  { %5301 = vmatprep.subr.bf16.mxu1 %v5300_v27 }
 0x2fa   :  { %5303 = vmatpush3.bf16.xpose.msra.mxu1 %v5300_v27 }
 0x2fb   :  { %5305 = vmatprep.subr.bf16.mxu1 %v5304_v28 }
 0x302   :  { %5307 = vmatpush3.bf16.xpose.msra.mxu1 %v5304_v28 }
 0x303   :  { %5309 = vmatprep.subr.bf16.mxu1 %v6075_v23 }
 0x309   :  { %4727 = vmatmul.mubr.f32.vlgmr.msra.gmra.mrb[2].mxu1 %v838_v3 }
 0x30a   :  { %5311 = vmatpush3.bf16.xpose.msra.mxu1 %v6075_v23  ;;  %4745 = vmatprep.mubr.f32.mxu1 %v829_v62  ;;  %v6177_v62 = vpop.permute.xlu0 %690 }
 0x30b   :  { %5313 = vmatprep.subr.bf16.mxu1 %v6089_v33 }
 0x312   :  { %5315 = vmatpush3.bf16.xpose.msra.mxu1 %v6089_v33 }
 0x313   :  { %5317 = vmatprep.subr.bf16.mxu1 %v6111_v17 }
 0x31a   :  { %5319 = vmatpush3.bf16.xpose.msra.mxu1 %v6111_v17 }
 0x31b   :  { %5321 = vmatprep.subr.bf16.mxu1 %v6133_v58 }
 0x322   :  { %5323 = vmatpush3.bf16.xpose.msra.mxu1 %v6133_v58 }
 0x323   :  { %5325 = vmatprep.subr.bf16.mxu1 %v6101_v59 }
 0x329   :  { %4746 = vmatmul.mubr.f32.vlgmr.msra.gmra.mrb[2].mxu1 %v839_v10 }
 0x32a   :  { %5327 = vmatpush3.bf16.xpose.msra.mxu1 %v6101_v59  ;;  %4764 = vmatprep.mubr.f32.mxu1 %v6032_v56 }
 0x32b   :  { %5329 = vmatprep.subr.bf16.mxu1 %v6123_v31 }
 0x332   :  { %5331 = vmatpush3.bf16.xpose.msra.mxu1 %v6123_v31 }
 0x333   :  { %5333 = vmatprep.subr.bf16.mxu1 %v6125_v39 }
 0x33a   :  { %5335 = vmatpush3.bf16.xpose.msra.mxu1 %v6125_v39 }
 0x33b   :  { %5337 = vmatprep.subr.bf16.mxu1 %v6130_v46 }
 0x33e   :  { %v1358_v19 = vpop.permute.xlu1 %1357 }
 0x33f   :  { %v1389_v24 = vand.u32 4294901760, %v1358_v19 }
 0x341   :  { %v1487_v30 = vsub.f32 %v1358_v19, %v1389_v24 }
 0x342   :  { %5339 = vmatpush3.bf16.xpose.msra.mxu1 %v6130_v46  ;;  %v1362_v34 = vpop.permute.xlu0 %1361 }
 0x343   :  { %5341 = vmatprep.subr.bf16.mxu1 %v6075_v23  ;;  %v1395_v57 = vand.u32 4294901760, %v1362_v34  ;;  %v1360_v59 = vpop.permute.xlu1 %1359  ;;  %v1488_v41 = vand.u32 4294901760, %v1487_v30 }
 0x344   :  { %v1392_v63 = vand.u32 4294901760, %v1360_v59 }
 0x345   :  { %v1501_v18 = vsub.f32 %v1362_v34, %v1395_v57  ;;  %v1489_v10 = vsub.f32 %v1487_v30, %v1488_v41 }
 0x346   :  { %v1494_v7 = vsub.f32 %v1360_v59, %v1392_v63  ;;  %v1366_v29 = vpop.permute.xlu0 %1365  ;;  %v6197_v14 = vpack.c.bf16 %v1395_v57, %v1392_v63 }
 0x347   :  { %v1502_v4 = vand.u32 4294901760, %v1501_v18  ;;  %v1401_v11 = vand.u32 4294901760, %v1366_v29  ;;  %v1364_v31 = vpop.permute.xlu1 %1363  ;;  %v1490_v59 = vand.u32 4294901760, %v1489_v10 }
 0x348   :  { %v1495_v32 = vand.u32 4294901760, %v1494_v7  ;;  %v1398_v35 = vand.u32 4294901760, %v1364_v31  ;;  %v6181_v37 = vpack.c.bf16 %v1501_v18, %v1494_v7 }
 0x349   :  { %v1503_v39 = vsub.f32 %v1501_v18, %v1502_v4  ;;  %v1515_v40 = vsub.f32 %v1366_v29, %v1401_v11  ;;  %4765 = vmatmul.mubr.f32.vlgmr.msra.gmra.mrb[2].mxu1 %v6128_v45  ;;  %v24_v18 = vld [vmem:[%s6579_s1 + $0x8] sm:$0xff] }
 0x34a   :  { %v1496_v46 = vsub.f32 %v1494_v7, %v1495_v32  ;;  %v1508_v55 = vsub.f32 %v1364_v31, %v1398_v35  ;;  %5343 = vmatpush3.bf16.xpose.msra.mxu1 %v6075_v23  ;;  %4783 = vmatprep.mubr.f32.mxu1 %v6032_v56  ;;  %v1356_v38 = vpop.permute.xlu0 %1355  ;;  %v6187_v1 = vpack.c.bf16 %v1502_v4, %v1495_v32  ;;  %v23_v7 = vld [vmem:[%s6579_s1] sm:$0xff] }
 0x34b   :  { %v1516_v42 = vand.u32 4294901760, %v1515_v40  ;;  %5345 = vmatprep.subr.bf16.mxu1 %v6089_v33  ;;  %v1386_v61 = vand.u32 4294901760, %v1356_v38  ;;  %v1504_v0 = vand.u32 4294901760, %v1503_v39  ;;  %v6209_v34 = vpack.c.bf16 %v1401_v11, %v1398_v35 }
 0x34c   :  { %v1509_v2 = vand.u32 4294901760, %v1508_v55  ;;  %v1497_v3 = vand.u32 4294901760, %v1496_v46  ;;  %v6189_v5 = vpack.c.bf16 %v1515_v40, %v1508_v55  ;;  %v706_v35 = vmul.f32 %v6025_v44, %v6173_v60 }
 0x34d   :  { %v1517_v6 = vsub.f32 %v1515_v40, %v1516_v42  ;;  %v6191_v8 = vpack.c.bf16 %v1389_v24, %v1386_v61  ;;  %v1480_v9 = vsub.f32 %v1356_v38, %v1386_v61  ;;  %v707_v39 = vmul.f32 %v6023_v43, %v6177_v62 }
 0x34e   :  { %v1510_v23 = vsub.f32 %v1508_v55, %v1509_v2  ;;  %v6193_v13 = vpack.c.bf16 %v1504_v0, %v1497_v3  ;;  %v6195_v56 = vpack.c.bf16 %v1516_v42, %v1509_v2 }
 0x34f   :  { %v1481_v20 = vand.u32 4294901760, %v1480_v9  ;;  %5357 = vmatprep.subr.bf16.mxu0 %v6191_v8  ;;  %v1518_v25 = vand.u32 4294901760, %v1517_v6  ;;  %v6200_v26 = vpack.c.bf16 %v1487_v30, %v1480_v9 }
 0x350   :  { %5359 = vmatpush3.bf16.msra.mxu0 %v6191_v8  ;;  %v1511_v27 = vand.u32 4294901760, %v1510_v23 }
 0x351   :  { %v1482_v28 = vsub.f32 %v1480_v9, %v1481_v20  ;;  %5361 = vmatprep.subr.bf16.mxu0 %v6197_v14  ;;  %v6204_v19 = vpack.c.bf16 %v1488_v41, %v1481_v20 }
 0x352   :  { %5347 = vmatpush3.bf16.xpose.msra.mxu1 %v6089_v33  ;;  %v6207_v24 = vpack.c.bf16 %v1518_v25, %v1511_v27 }
 0x353   :  { %5349 = vmatprep.subr.bf16.mxu1 %v6111_v17  ;;  %v1483_v57 = vand.u32 4294901760, %v1482_v28 }
 0x354   :  { %5363 = vmatpush3.bf16.msra.mxu0 %v6197_v14 }
 0x355   :  { %5365 = vmatprep.subr.bf16.mxu0 %v6209_v34  ;;  %v6214_v30 = vpack.c.bf16 %v1490_v59, %v1483_v57 }
 0x358   :  { %5367 = vmatpush3.bf16.msra.mxu0 %v6209_v34 }
 0x35a   :  { %5351 = vmatpush3.bf16.xpose.msra.mxu1 %v6111_v17 }
 0x35b   :  { %5353 = vmatprep.subr.bf16.mxu1 %v6133_v58 }
 0x362   :  { %5355 = vmatpush3.bf16.xpose.msra.mxu1 %v6133_v58 }
 0x369   :  { %4784 = vmatmul.mubr.f32.vlgmr.msra.gmra.mrb[2].mxu1 %v6128_v45 }
 0x3b3   :  { %v4690_v33 = vpop.f32.mrb[2].mxu0 }
 0x3b4   :  { %v833_v63 = vpop.f32.mrb[3].mxu0  ;;  %v844_v29 = vadd.f32 %v4690_v33, %v24_v18 }
 0x3b5   :  { %v834_v4 = vadd.f32 %v833_v63, %v23_v7 }
 0x43c   :  { %v4785_v11 = vpop.f32.mrb[2].mxu1 }
 0x43d   :  { %v5697_v17 = vadd.f32 %v4785_v11, %v844_v29  ;;  %v1324_v31 = vpop.f32.mrb[3].mxu1  ;;  %v1978_v11 = vand.u32 4294901760, %v5980_v53 }
 0x43e   :  { %v5699_v32 = vadd.f32 %v1324_v31, %v834_v4  ;;  %v1981_v4 = vand.u32 4294901760, %v5957_v50 }
 0x43f   :  { %v1338_v58 = vsel %vm1334_vm5, %v5697_v17, -inf }
 0x440   :  { %1339 = vmax.xlane.f32.xlu0 %v1338_v58  ;;  %v1335_v45 = vsel %vm1334_vm5, %v5699_v32, -inf  ;;  %v6362_v58 = vsub.f32 %v5980_v53, %v1978_v11 }
 0x441   :  { %1336 = vmax.xlane.f32.xlu1 %v1335_v45  ;;  %v1987_v45 = vand.u32 4294901760, %v5971_v52 }
 0x452   :  { %1367 = vrot.lane.b32.xlu1 %v706_v35, %s5831_s27  ;;  %v1984_v35 = vand.u32 4294901760, %v5987_v54 }
 0x456   :  { %1369 = vrot.lane.b32.xlu0 %v707_v39, %s5831_s27  ;;  %2553 = vrot.lane.b32.xlu1 %v5893_v15, %s5830_s12  ;;  %v6368_v39 = vsub.f32 %v5971_v52, %v1987_v45  ;;  %v2089_v52 = vand.u32 4294901760, %v6362_v58 }
 0x45a   :  { %2555 = vrot.lane.b32.xlu0 %v5898_v16, %s5830_s12  ;;  %2557 = vrot.lane.b32.xlu1 %v5907_v21, %s5830_s12 }
 0x45e   :  { %2559 = vrot.lane.b32.xlu0 %v5912_v22, %s5830_s12  ;;  %2566 = vrot.lane.b32.xlu1 %v6019_v36, %s5830_s12 }
 0x4cd   :  { %v1340_v44 = vpop.xlane.xlu0 %1339 }
 0x4ce   :  { %v1342_v60 = vsub.f32 %v5697_v17, %v1340_v44  ;;  %v1337_v43 = vpop.xlane.xlu1 %1336 }
 0x4cf   :  { %v1341_v62 = vsub.f32 %v5699_v32, %v1337_v43 }
 0x4d0   :  { %v1345_v40 = vmul.f32 1.442695, %v1342_v60 }
 0x4d1   :  { %v1343_v41 = vmul.f32 1.442695, %v1341_v62  ;;  %v1370_v46 = vpop.permute.xlu0 %1369  ;;  %v6377_v62 = vpack.c.bf16 %v1987_v45, %v1984_v35 }
 0x4d2   :  { %5786 = vpow2.f32 %v1345_v40  ;;  %v1407_v15 = vand.u32 4294901760, %v1370_v46  ;;  %v1368_v55 = vpop.permute.xlu1 %1367  ;;  %v6380_v40 = vsub.f32 %v5987_v54, %v1984_v35 }
 0x4d3   :  { %5788 = vpow2.f32 %v1343_v41  ;;  %v1404_v16 = vand.u32 4294901760, %v1368_v55 }
 0x4d4   :  { %v1529_v6 = vsub.f32 %v1370_v46, %v1407_v15  ;;  %v2103_v54 = vand.u32 4294901760, %v6380_v40 }
 0x4d5   :  { %v6245_v38 = vpack.c.bf16 %v1407_v15, %v1404_v16  ;;  %v1522_v9 = vsub.f32 %v1368_v55, %v1404_v16  ;;  %v2090_v16 = vsub.f32 %v6362_v58, %v2089_v52 }
 0x4d6   :  { %v1530_v27 = vand.u32 4294901760, %v1529_v6 }
 0x4d7   :  { %5369 = vmatprep.subr.bf16.mxu0 %v6245_v38  ;;  %v1523_v28 = vand.u32 4294901760, %v1522_v9 }
 0x4d8   :  { %5371 = vmatpush3.bf16.msra.mxu0 %v6245_v38  ;;  %v1531_v33 = vsub.f32 %v1529_v6, %v1530_v27 }
 0x4d9   :  { %5373 = vmatprep.subr.bf16.mxu0 %v6214_v30  ;;  %v1524_v63 = vsub.f32 %v1522_v9, %v1523_v28 }
 0x4da   :  { %v1532_v7 = vand.u32 4294901760, %v1531_v33 }
 0x4db   :  { %v1525_v18 = vand.u32 4294901760, %v1524_v63  ;;  %v5496_v63 = vpack.c.bf16 %v6368_v39, %v6380_v40 }
 0x4dc   :  { %v5787_v21 = vpop.eup %5786 }
 0x4dd   :  { %v5789_v22 = vpop.eup %5788  ;;  %v1383_v36 = vsel %vm1334_vm5, %v5787_v21, 0  ;;  %v5384_v29 = vpack.c.bf16 %v1532_v7, %v1525_v18  ;;  %v2110_v21 = vand.u32 4294901760, %v6368_v39  ;;  %v2556_v7 = vpop.permute.xlu0 %2555 }
 0x4de   :  { %v6251_v42 = vand.u32 4294901760, %v1383_v36  ;;  %v1380_v61 = vsel %vm1334_vm5, %v5789_v22, 0 }
 0x4df   :  { %v6254_v0 = vand.u32 4294901760, %v1380_v61  ;;  %v5528_v18 = vpack.c.bf16 %v2110_v21, %v2103_v54 }
 0x4e0   :  { %v6257_v2 = vsub.f32 %v1383_v36, %v6251_v42  ;;  %v2091_v36 = vand.u32 4294901760, %v2090_v16 }
 0x4e1   :  { %v6260_v3 = vsub.f32 %v1380_v61, %v6254_v0 }
 0x4e2   :  { %v6263_v10 = vand.u32 4294901760, %v6257_v2 }
 0x4e3   :  { %v6266_v23 = vand.u32 4294901760, %v6260_v3 }
 0x4e4   :  { %v1471_v20 = vsub.f32 %v6257_v2, %v6263_v10 }
 0x4e5   :  { %v1461_v25 = vsub.f32 %v6260_v3, %v6266_v23 }
 0x4e6   :  { %v6274_v59 = vand.u32 4294901760, %v1471_v20 }
 0x4e7   :  { %v6272_v57 = vand.u32 4294901760, %v1461_v25 }
 0x4e9   :  { %4802 = vmatprep.mubr.f32.mxu0 %v6272_v57 }
 0x4ea   :  { %4803 = vmatmul.mubr.f32.vlgmr.msra.gmra.mrb[4].mxu0 %v6274_v59 }
 0x4eb   :  { %5375 = vmatpush3.bf16.msra.mxu0 %v6214_v30  ;;  %4821 = vmatprep.mubr.f32.mxu0 %v6254_v0 }
 0x4ec   :  { %5377 = vmatprep.subr.bf16.mxu0 %v6193_v13 }
 0x4ef   :  { %5379 = vmatpush3.bf16.msra.mxu0 %v6193_v13  ;;  %v5400_v13 = vpack.c.bf16 %v1529_v6, %v1522_v9  ;;  %v2104_v6 = vsub.f32 %v6380_v40, %v2103_v54  ;;  %v2111_v9 = vsub.f32 %v6368_v39, %v2110_v21 }
 0x4f0   :  { %5381 = vmatprep.subr.bf16.mxu0 %v6207_v24 }
 0x4f1   :  { %v2105_v25 = vand.u32 4294901760, %v2104_v6 }
 0x4f3   :  { %5383 = vmatpush3.bf16.msra.mxu0 %v6207_v24 }
 0x4f4   :  { %5385 = vmatprep.subr.bf16.mxu0 %v5384_v29 }
 0x4f7   :  { %5387 = vmatpush3.bf16.msra.mxu0 %v5384_v29 }
 0x4f8   :  { %5389 = vmatprep.subr.bf16.mxu0 %v6200_v26 }
 0x4fa   :  { %4822 = vmatmul.mubr.f32.vlgmr.msra.gmra.mrb[4].mxu0 %v6251_v42 }
 0x4fb   :  { %5391 = vmatpush3.bf16.msra.mxu0 %v6200_v26  ;;  %4840 = vmatprep.mubr.f32.mxu0 %v6260_v3 }
 0x4fc   :  { %5393 = vmatprep.subr.bf16.mxu0 %v6181_v37 }
 0x4ff   :  { %5395 = vmatpush3.bf16.msra.mxu0 %v6181_v37  ;;  %v5432_v37 = vpack.c.bf16 %v1530_v27, %v1523_v28  ;;  %v2112_v27 = vand.u32 4294901760, %v2111_v9 }
 0x500   :  { %5397 = vmatprep.subr.bf16.mxu0 %v6189_v5 }
 0x501   :  { %v5480_v28 = vpack.c.bf16 %v2112_v27, %v2105_v25 }
 0x503   :  { %5399 = vmatpush3.bf16.msra.mxu0 %v6189_v5  ;;  %v1969_v5 = vand.u32 4294901760, %v5952_v49 }
 0x504   :  { %5401 = vmatprep.subr.bf16.mxu0 %v5400_v13 }
 0x505   :  { %v6323_v26 = vsub.f32 %v5952_v49, %v1969_v5 }
 0x507   :  { %5403 = vmatpush3.bf16.msra.mxu0 %v5400_v13  ;;  %v2068_v49 = vand.u32 4294901760, %v6323_v26  ;;  %v2579_v13 = vand.u32 4294901760, %v2556_v7 }
 0x508   :  { %5405 = vmatprep.subr.bf16.mxu0 %v6191_v8 }
 0x509   :  { %v2069_v17 = vsub.f32 %v6323_v26, %v2068_v49 }
 0x50a   :  { %4841 = vmatmul.mubr.f32.vlgmr.msra.gmra.mrb[4].mxu0 %v6257_v2 }
 0x50b   :  { %5407 = vmatpush3.bf16.msra.mxu0 %v6191_v8  ;;  %4859 = vmatprep.mubr.f32.mxu0 %v6266_v23  ;;  %v2070_v60 = vand.u32 4294901760, %v2069_v17 }
 0x50c   :  { %5409 = vmatprep.subr.bf16.mxu0 %v6197_v14 }
 0x50f   :  { %5411 = vmatpush3.bf16.msra.mxu0 %v6197_v14 }
 0x510   :  { %5413 = vmatprep.subr.bf16.mxu0 %v6209_v34 }
 0x513   :  { %5415 = vmatpush3.bf16.msra.mxu0 %v6209_v34 }
 0x514   :  { %5417 = vmatprep.subr.bf16.mxu0 %v6245_v38 }
 0x517   :  { %5419 = vmatpush3.bf16.msra.mxu0 %v6245_v38 }
 0x518   :  { %5421 = vmatprep.subr.bf16.mxu0 %v6204_v19 }
 0x51a   :  { %4860 = vmatmul.mubr.f32.vlgmr.msra.gmra.mrb[4].mxu0 %v6263_v10 }
 0x51b   :  { %5423 = vmatpush3.bf16.msra.mxu0 %v6204_v19  ;;  %4878 = vmatprep.mubr.f32.mxu0 %v6254_v0  ;;  %v1975_v19 = vand.u32 4294901760, %v5943_v48 }
 0x51c   :  { %5425 = vmatprep.subr.bf16.mxu0 %v6187_v1 }
 0x51d   :  { %v6332_v24 = vsub.f32 %v5943_v48, %v1975_v19  ;;  %v6346_v48 = vsub.f32 %v5957_v50, %v1981_v4  ;;  %v6359_v50 = vpack.c.bf16 %v1981_v4, %v1978_v11 }
 0x51f   :  { %5427 = vmatpush3.bf16.msra.mxu0 %v6187_v1  ;;  %v1966_v1 = vand.u32 4294901760, %v5938_v47  ;;  %v2082_v32 = vand.u32 4294901760, %v6332_v24  ;;  %v2096_v41 = vand.u32 4294901760, %v6346_v48  ;;  %v5492_v33 = vpack.c.bf16 %v6346_v48, %v6362_v58 }
 0x520   :  { %5429 = vmatprep.subr.bf16.mxu0 %v6195_v56 }
 0x521   :  { %v2083_v53 = vsub.f32 %v6332_v24, %v2082_v32 }
 0x523   :  { %5431 = vmatpush3.bf16.msra.mxu0 %v6195_v56  ;;  %v6320_v56 = vsub.f32 %v5938_v47, %v1966_v1  ;;  %v2084_v55 = vand.u32 4294901760, %v2083_v53 }
 0x524   :  { %5433 = vmatprep.subr.bf16.mxu0 %v5432_v37 }
 0x525   :  { %v2061_v47 = vand.u32 4294901760, %v6320_v56 }
 0x527   :  { %5435 = vmatpush3.bf16.msra.mxu0 %v5432_v37 }
 0x528   :  { %5437 = vmatprep.subr.bf16.mxu0 %v6191_v8 }
 0x52a   :  { %4879 = vmatmul.mubr.f32.vlgmr.msra.gmra.mrb[4].mxu0 %v6251_v42 }
 0x52b   :  { %5439 = vmatpush3.bf16.msra.mxu0 %v6191_v8  ;;  %4897 = vmatprep.mubr.f32.mxu0 %v6254_v0  ;;  %v6326_v8 = vpack.c.bf16 %v1969_v5, %v1966_v1  ;;  %v2673_v1 = vsub.f32 %v2556_v7, %v2579_v13 }
 0x52c   :  { %5441 = vmatprep.subr.bf16.mxu0 %v6197_v14 }
 0x52f   :  { %5443 = vmatpush3.bf16.msra.mxu0 %v6197_v14  ;;  %v1972_v14 = vand.u32 4294901760, %v5966_v51 }
 0x530   :  { %5445 = vmatprep.subr.bf16.mxu0 %v6209_v34 }
 0x531   :  { %v6335_v30 = vsub.f32 %v5966_v51, %v1972_v14  ;;  %v2062_v51 = vsub.f32 %v6320_v56, %v2061_v47 }
 0x533   :  { %5447 = vmatpush3.bf16.msra.mxu0 %v6209_v34  ;;  %v6340_v34 = vpack.c.bf16 %v1975_v19, %v1972_v14  ;;  %v2075_v31 = vand.u32 4294901760, %v6335_v30  ;;  %v2063_v44 = vand.u32 4294901760, %v2062_v51 }
 0x534   :  { %5449 = vmatprep.subr.bf16.mxu0 %v6245_v38 }
 0x535   :  { %v2076_v43 = vsub.f32 %v6335_v30, %v2075_v31  ;;  %v5468_v46 = vpack.c.bf16 %v2070_v60, %v2063_v44 }
 0x537   :  { %5451 = vmatpush3.bf16.msra.mxu0 %v6245_v38  ;;  %v2077_v15 = vand.u32 4294901760, %v2076_v43  ;;  %v2097_v38 = vsub.f32 %v6346_v48, %v2096_v41 }
 0x538   :  { %5453 = vmatprep.subr.bf16.mxu0 %v6326_v8 }
 0x539   :  { %v5472_v22 = vpack.c.bf16 %v2084_v55, %v2077_v15  ;;  %v2098_v61 = vand.u32 4294901760, %v2097_v38 }
 0x53a   :  { %4898 = vmatmul.mubr.f32.vlgmr.msra.gmra.mrb[4].mxu0 %v6251_v42 }
 0x53b   :  { %5455 = vmatpush3.bf16.msra.mxu0 %v6326_v8  ;;  %4916 = vmatprep.mubr.f32.mxu0 %v6272_v57  ;;  %v5476_v20 = vpack.c.bf16 %v2098_v61, %v2091_v36  ;;  %v5484_v57 = vpack.c.bf16 %v6323_v26, %v6320_v56  ;;  %v2560_v56 = vpop.permute.xlu0 %2559 }
 0x53c   :  { %5457 = vmatprep.subr.bf16.mxu0 %v6340_v34  ;;  %v2585_v14 = vand.u32 4294901760, %v2560_v56 }
 0x53f   :  { %5459 = vmatpush3.bf16.msra.mxu0 %v6340_v34 }
 0x540   :  { %5461 = vmatprep.subr.bf16.mxu0 %v6359_v50 }
 0x543   :  { %5463 = vmatpush3.bf16.msra.mxu0 %v6359_v50 }
 0x544   :  { %5465 = vmatprep.subr.bf16.mxu0 %v6377_v62 }
 0x547   :  { %5467 = vmatpush3.bf16.msra.mxu0 %v6377_v62 }
 0x548   :  { %5469 = vmatprep.subr.bf16.mxu0 %v5468_v46 }
 0x54a   :  { %4917 = vmatmul.mubr.f32.vlgmr.msra.gmra.mrb[6].mxu0 %v6274_v59  ;;  %v5488_v59 = vpack.c.bf16 %v6332_v24, %v6335_v30 }
 0x54b   :  { %5471 = vmatpush3.bf16.msra.mxu0 %v5468_v46  ;;  %4935 = vmatprep.mubr.f32.mxu0 %v6254_v0 }
 0x54c   :  { %5473 = vmatprep.subr.bf16.mxu0 %v5472_v22 }
 0x54f   :  { %5475 = vmatpush3.bf16.msra.mxu0 %v5472_v22 }
 0x550   :  { %5477 = vmatprep.subr.bf16.mxu0 %v5476_v20 }
 0x553   :  { %5479 = vmatpush3.bf16.msra.mxu0 %v5476_v20 }
 0x554   :  { %5481 = vmatprep.subr.bf16.mxu0 %v5480_v28 }
 0x557   :  { %5483 = vmatpush3.bf16.msra.mxu0 %v5480_v28 }
 0x558   :  { %5485 = vmatprep.subr.bf16.mxu0 %v5484_v57 }
 0x55a   :  { %4936 = vmatmul.mubr.f32.vlgmr.msra.gmra.mrb[6].mxu0 %v6251_v42 }
 0x55b   :  { %5487 = vmatpush3.bf16.msra.mxu0 %v5484_v57  ;;  %4954 = vmatprep.mubr.f32.mxu0 %v6260_v3  ;;  %v5516_v3 = vpack.c.bf16 %v2068_v49, %v2061_v47  ;;  %v2687_v49 = vsub.f32 %v2560_v56, %v2585_v14 }
 0x55c   :  { %5489 = vmatprep.subr.bf16.mxu0 %v5488_v59 }
 0x55d   :  { %v2688_v51 = vand.u32 4294901760, %v2687_v49 }
 0x55f   :  { %5491 = vmatpush3.bf16.msra.mxu0 %v5488_v59 }
 0x560   :  { %5493 = vmatprep.subr.bf16.mxu0 %v5492_v33 }
 0x563   :  { %5495 = vmatpush3.bf16.msra.mxu0 %v5492_v33  ;;  %v5802_v33 = vld [vmem:[%s6578_s0 + $0x8] sm:$0xff] }
 0x564   :  { %5497 = vmatprep.subr.bf16.mxu0 %v5496_v63 }
 0x567   :  { %5499 = vmatpush3.bf16.msra.mxu0 %v5496_v63 }
 0x568   :  { %5501 = vmatprep.subr.bf16.mxu0 %v6326_v8 }
 0x56a   :  { %4955 = vmatmul.mubr.f32.vlgmr.msra.gmra.mrb[6].mxu0 %v6257_v2  ;;  %v5520_v2 = vpack.c.bf16 %v2082_v32, %v2075_v31 }
 0x56b   :  { %5503 = vmatpush3.bf16.msra.mxu0 %v6326_v8  ;;  %4973 = vmatprep.mubr.f32.mxu0 %v6266_v23  ;;  %v5524_v23 = vpack.c.bf16 %v2096_v41, %v2089_v52 }
 0x56c   :  { %5505 = vmatprep.subr.bf16.mxu0 %v6340_v34 }
 0x56f   :  { %5507 = vmatpush3.bf16.msra.mxu0 %v6340_v34 }
 0x570   :  { %5509 = vmatprep.subr.bf16.mxu0 %v6359_v50 }
 0x573   :  { %5511 = vmatpush3.bf16.msra.mxu0 %v6359_v50 }
 0x574   :  { %5513 = vmatprep.subr.bf16.mxu0 %v6377_v62 }
 0x577   :  { %5515 = vmatpush3.bf16.msra.mxu0 %v6377_v62 }
 0x578   :  { %5517 = vmatprep.subr.bf16.mxu0 %v5516_v3 }
 0x57a   :  { %4974 = vmatmul.mubr.f32.vlgmr.msra.gmra.mrb[6].mxu0 %v6263_v10  ;;  %v2554_v10 = vpop.permute.xlu1 %2553 }
 0x57b   :  { %5519 = vmatpush3.bf16.msra.mxu0 %v5516_v3  ;;  %4992 = vmatprep.mubr.f32.mxu0 %v6254_v0  ;;  %v2576_v29 = vand.u32 4294901760, %v2554_v10  ;;  %v5803_v3 = vld [vmem:[%s6578_s0] sm:$0xff] }
 0x57c   :  { %5521 = vmatprep.subr.bf16.mxu0 %v5520_v2 }
 0x57d   :  { %v2666_v37 = vsub.f32 %v2554_v10, %v2576_v29 }
 0x57e   :  { %v2558_v5 = vpop.permute.xlu1 %2557 }
 0x57f   :  { %5523 = vmatpush3.bf16.msra.mxu0 %v5520_v2  ;;  %v2667_v26 = vand.u32 4294901760, %v2666_v37  ;;  %v2582_v19 = vand.u32 4294901760, %v2558_v5 }
 0x580   :  { %5525 = vmatprep.subr.bf16.mxu0 %v5524_v23 }
 0x581   :  { %v2668_v24 = vsub.f32 %v2666_v37, %v2667_v26  ;;  %v2680_v30 = vsub.f32 %v2558_v5, %v2582_v19  ;;  %v6441_v47 = vpack.c.bf16 %v2585_v14, %v2582_v19 }
 0x582   :  { %v2567_v25 = vpop.permute.xlu1 %2566 }
 0x583   :  { %5527 = vmatpush3.bf16.msra.mxu0 %v5524_v23  ;;  %v2681_v4 = vand.u32 4294901760, %v2680_v30  ;;  %v2669_v11 = vand.u32 4294901760, %v2668_v24  ;;  %v5568_v58 = vpack.c.bf16 %v2687_v49, %v2680_v30 }
 0x584   :  { %5529 = vmatprep.subr.bf16.mxu0 %v5528_v18 }
 0x585   :  { %v2682_v31 = vsub.f32 %v2680_v30, %v2681_v4  ;;  %v5584_v39 = vpack.c.bf16 %v2688_v51, %v2681_v4 }
 0x587   :  { %5531 = vmatpush3.bf16.msra.mxu0 %v5528_v18  ;;  %v2683_v45 = vand.u32 4294901760, %v2682_v31 }
 0x588   :  { %5533 = vmatprep.subr.bf16.mxu0 %v6326_v8 }
 0x58a   :  { %4993 = vmatmul.mubr.f32.vlgmr.msra.gmra.mrb[6].mxu0 %v6251_v42 }
 0x58b   :  { %5535 = vmatpush3.bf16.msra.mxu0 %v6326_v8  ;;  %5011 = vmatprep.mubr.f32.mxu0 %v6254_v0  ;;  %v6437_v0 = vpack.c.bf16 %v2579_v13, %v2576_v29  ;;  %v2674_v8 = vand.u32 4294901760, %v2673_v1 }
 0x58c   :  { %5537 = vmatprep.subr.bf16.mxu0 %v6340_v34 }
 0x58d   :  { %5549 = vmatprep.subr.bf16.mxu1 %v6437_v0  ;;  %v5580_v17 = vpack.c.bf16 %v2674_v8, %v2667_v26 }
 0x58e   :  { %5551 = vmatpush3.bf16.msra.mxu1 %v6437_v0 }
 0x58f   :  { %5539 = vmatpush3.bf16.msra.mxu0 %v6340_v34  ;;  %v5564_v34 = vpack.c.bf16 %v2673_v1, %v2666_v37  ;;  %5553 = vmatprep.subr.bf16.mxu1 %v6441_v47 }
 0x590   :  { %5541 = vmatprep.subr.bf16.mxu0 %v6359_v50 }
 0x592   :  { %5555 = vmatpush3.bf16.msra.mxu1 %v6441_v47 }
 0x593   :  { %5543 = vmatpush3.bf16.msra.mxu0 %v6359_v50  ;;  %v2689_v50 = vsub.f32 %v2687_v49, %v2688_v51 }
 0x594   :  { %5545 = vmatprep.subr.bf16.mxu0 %v6377_v62 }
 0x595   :  { %v2690_v35 = vand.u32 4294901760, %v2689_v50 }
 0x597   :  { %5547 = vmatpush3.bf16.msra.mxu0 %v6377_v62  ;;  %v5560_v44 = vpack.c.bf16 %v2690_v35, %v2683_v45  ;;  %v41_v45 = vld [vmem:[%s6581_s3 + $0x18] sm:$0xff] }
 0x59a   :  { %5012 = vmatmul.mubr.f32.vlgmr.msra.gmra.mrb[6].mxu0 %v6251_v42  ;;  %v2675_v42 = vsub.f32 %v2673_v1, %v2674_v8 }
 0x59c   :  { %v2676_v48 = vand.u32 4294901760, %v2675_v42 }
 0x59e   :  { %v5556_v32 = vpack.c.bf16 %v2676_v48, %v2669_v11 }
 0x5a0   :  { %5557 = vmatprep.subr.bf16.mxu1 %v5556_v32 }
 0x60d   :  { %v4899_v60 = vpop.f32.mrb[4].mxu0 }
 0x60e   :  { %v1955_v43 = vpop.f32.mrb[5].mxu0 }
 0x66d   :  { %v5013_v53 = vpop.f32.mrb[6].mxu0 }
 0x66e   :  { %5790 = vrcp.f32 %v5013_v53  ;;  %v2535_v62 = vpop.f32.mrb[7].mxu0 }
 0x66f   :  { %5792 = vrcp.f32 %v2535_v62 }
 0x678   :  { %v5791_v40 = vpop.eup %5790 }
 0x679   :  { %v5793_v52 = vpop.eup %5792  ;;  %v2548_v41 = vmul.f32 %v5791_v40, %v4899_v60 }
 0x67a   :  { %v2547_v46 = vmul.f32 %v5793_v52, %v1955_v43  ;;  %v3175_v43 = vand.u32 4294901760, %v41_v45 }
 0x67b   :  { %v2573_v15 = vsel %vm44_vm0, %v2548_v41, 0 }
 0x67c   :  { %v2570_v55 = vsel %vm44_vm0, %v2547_v46, 0  ;;  %v2654_v16 = vand.u32 4294901760, %v2573_v15  ;;  %v3269_v41 = vsub.f32 %v41_v45, %v3175_v43 }
 0x67d   :  { %v2644_v38 = vand.u32 4294901760, %v2570_v55 }
 0x67e   :  { %v2655_v54 = vsub.f32 %v2573_v15, %v2654_v16  ;;  %v42_v15 = vld [vmem:[%s6581_s3 + $0x28] sm:$0xff] }
 0x67f   :  { %v2645_v21 = vsub.f32 %v2570_v55, %v2644_v38  ;;  %v43_v55 = vld [vmem:[%s6581_s3 + $0x38] sm:$0xff] }
 0x680   :  { %v2656_v22 = vand.u32 4294901760, %v2655_v54 }
 0x681   :  { %v2646_v36 = vand.u32 4294901760, %v2645_v21 }
 0x682   :  { %v2657_v61 = vsub.f32 %v2655_v54, %v2656_v22 }
 0x683   :  { %v2647_v6 = vsub.f32 %v2645_v21, %v2646_v36 }
 0x684   :  { %v2658_v20 = vand.u32 4294901760, %v2657_v61 }
 0x685   :  { %v2648_v9 = vand.u32 4294901760, %v2647_v6 }
 0x687   :  { %5022 = vmatprep.mubr.f32.mxu1 %v2648_v9 }
 0x688   :  { %5023 = vmatmul.mubr.f32.vlgmr.msra.gmra.mrb[4].mxu1 %v2658_v20 }
 0x689   :  { %5559 = vmatpush3.bf16.msra.mxu1 %v5556_v32  ;;  %5033 = vmatprep.mubr.f32.mxu1 %v2644_v38 }
 0x68a   :  { %5561 = vmatprep.subr.bf16.mxu1 %v5560_v44 }
 0x68d   :  { %5563 = vmatpush3.bf16.msra.mxu1 %v5560_v44 }
 0x68e   :  { %5565 = vmatprep.subr.bf16.mxu1 %v5564_v34 }
 0x690   :  { %5034 = vmatmul.mubr.f32.vlgmr.msra.gmra.mrb[4].mxu1 %v2654_v16 }
 0x691   :  { %5567 = vmatpush3.bf16.msra.mxu1 %v5564_v34  ;;  %5044 = vmatprep.mubr.f32.mxu1 %v2645_v21 }
 0x692   :  { %5569 = vmatprep.subr.bf16.mxu1 %v5568_v58 }
 0x695   :  { %5571 = vmatpush3.bf16.msra.mxu1 %v5568_v58  ;;  %v40_v58 = vld [vmem:[%s6581_s3 + $0x8] sm:$0xff] }
 0x696   :  { %5573 = vmatprep.subr.bf16.mxu1 %v6437_v0  ;;  %v3172_v60 = vand.u32 4294901760, %v40_v58 }
 0x698   :  { %5045 = vmatmul.mubr.f32.vlgmr.msra.gmra.mrb[4].mxu1 %v2655_v54  ;;  %v6485_v40 = vpack.c.bf16 %v3175_v43, %v3172_v60  ;;  %v3262_v52 = vsub.f32 %v40_v58, %v3172_v60  ;;  %v3181_v54 = vand.u32 4294901760, %v43_v55 }
 0x699   :  { %5575 = vmatpush3.bf16.msra.mxu1 %v6437_v0  ;;  %5055 = vmatprep.mubr.f32.mxu1 %v2646_v36  ;;  %v3270_v36 = vand.u32 4294901760, %v3269_v41 }
 0x69a   :  { %5577 = vmatprep.subr.bf16.mxu1 %v6441_v47  ;;  %5597 = vmatprep.subr.bf16.mxu0 %v6485_v40  ;;  %v3263_v21 = vand.u32 4294901760, %v3262_v52 }
 0x69b   :  { %5599 = vmatpush3.bf16.msra.mxu0 %v6485_v40 }
 0x69c   :  { %v3264_v9 = vsub.f32 %v3262_v52, %v3263_v21 }
 0x69d   :  { %5579 = vmatpush3.bf16.msra.mxu1 %v6441_v47 }
 0x69e   :  { %5581 = vmatprep.subr.bf16.mxu1 %v5580_v17 }
 0x6a0   :  { %5056 = vmatmul.mubr.f32.vlgmr.msra.gmra.mrb[4].mxu1 %v2656_v22 }
 0x6a1   :  { %5583 = vmatpush3.bf16.msra.mxu1 %v5580_v17  ;;  %5066 = vmatprep.mubr.f32.mxu1 %v2644_v38 }
 0x6a2   :  { %5585 = vmatprep.subr.bf16.mxu1 %v5584_v39 }
 0x6a5   :  { %5587 = vmatpush3.bf16.msra.mxu1 %v5584_v39  ;;  %v5804_v39 = vld [vmem:[%s6582_s4] ss:$0 sm:$0xff] }
 0x6a6   :  { %5589 = vmatprep.subr.bf16.mxu1 %v6437_v0 }
 0x6a8   :  { %5067 = vmatmul.mubr.f32.vlgmr.msra.gmra.mrb[4].mxu1 %v2654_v16 }
 0x6a9   :  { %5591 = vmatpush3.bf16.msra.mxu1 %v6437_v0  ;;  %5077 = vmatprep.mubr.f32.mxu1 %v2644_v38  ;;  %v3178_v38 = vand.u32 4294901760, %v42_v15 }
 0x6aa   :  { %5593 = vmatprep.subr.bf16.mxu1 %v6441_v47 }
 0x6ab   :  { %v6498_v6 = vpack.c.bf16 %v3181_v54, %v3178_v38  ;;  %v3276_v20 = vsub.f32 %v42_v15, %v3178_v38 }
 0x6ad   :  { %5595 = vmatpush3.bf16.msra.mxu1 %v6441_v47  ;;  %5601 = vmatprep.subr.bf16.mxu0 %v6498_v6 }
 0x6ae   :  { %5603 = vmatpush3.bf16.msra.mxu0 %v6498_v6 }
 0x6b0   :  { %5078 = vmatmul.mubr.f32.vlgmr.msra.gmra.mrb[4].mxu1 %v2654_v16 }
 0x783   :  { %v5079_v27 = vpop.f32.mrb[4].mxu1 }
 0x784   :  { %v5700_v28 = vadd.f32 %v5079_v27, %v2567_v25  ;;  %v3093_v57 = vpop.f32.mrb[5].mxu1  ;;  %v3283_v27 = vsub.f32 %v43_v55, %v3181_v54 }
 0x785   :  { %v5701_v59 = vadd.f32 %v3093_v57, %v2567_v25  ;;  %v3271_v25 = vsub.f32 %v3269_v41, %v3270_v36  ;;  %v3265_v57 = vand.u32 4294901760, %v3264_v9 }
 0x786   :  { %v6458_v63 = vadd.f32 %v5802_v33, %v5700_v28 }
 0x787   :  { %v6463_v2 = vadd.f32 %v5803_v3, %v5701_v59  ;;  %v3277_v59 = vand.u32 4294901760, %v3276_v20  ;;  %v3272_v33 = vand.u32 4294901760, %v3271_v25  ;;  %v3284_v3 = vand.u32 4294901760, %v3283_v27 }
 0x788   :  { %v3108_v23 = vsel %vm44_vm0, %v6458_v63, 0.0 }
 0x789   :  { %3109 = vadd.xlane.f32.xlu1 %v3108_v23  ;;  %v3105_v18 = vsel %vm44_vm0, %v6463_v2, 0.0  ;;  %v3278_v23 = vsub.f32 %v3276_v20, %v3277_v59 }
 0x78a   :  { %3106 = vadd.xlane.f32.xlu0 %v3105_v18  ;;  %v5604_v18 = vpack.c.bf16 %v3272_v33, %v3265_v57 }
 0x78c   :  { %5605 = vmatprep.subr.bf16.mxu0 %v5604_v18 }
 0x816   :  { %v3110_v10 = vpop.xlane.xlu1 %3109 }
 0x817   :  { %v3112_v7 = vmul.f32 0.03125, %v3110_v10  ;;  %v3107_v29 = vpop.xlane.xlu0 %3106  ;;  %v3285_v10 = vsub.f32 %v3283_v27, %v3284_v3 }
 0x818   :  { %v3111_v13 = vmul.f32 0.03125, %v3107_v29 }
 0x819   :  { %v3114_v37 = vsub.f32 %v6458_v63, %v3112_v7  ;;  %v3279_v7 = vand.u32 4294901760, %v3278_v23  ;;  %v3286_v29 = vand.u32 4294901760, %v3285_v10 }
 0x81a   :  { %v3113_v0 = vsub.f32 %v6463_v2, %v3111_v13  ;;  %v5612_v13 = vpack.c.bf16 %v3269_v41, %v3262_v52 }
 0x81b   :  { %3147 = vrot.lane.b32.xlu1 %v3114_v37, %s5831_s27  ;;  %v3116_v56 = vmul.f32 %v3114_v37, %v3114_v37  ;;  %v5616_v37 = vpack.c.bf16 %v3283_v27, %v3276_v20 }
 0x81c   :  { %v3115_v1 = vmul.f32 %v3113_v0, %v3113_v0 }
 0x81d   :  { %v3120_v26 = vsel %vm44_vm0, %v3116_v56, 0.0 }
 0x81e   :  { %v3117_v5 = vsel %vm44_vm0, %v3115_v1, 0.0  ;;  %v5632_v1 = vpack.c.bf16 %v3284_v3, %v3277_v59 }
 0x81f   :  { %3118 = vadd.xlane.f32.xlu0 %v3117_v5  ;;  %v6509_v5 = vld [vmem:[%s6582_s4 + $0x2] ss:$0 sm:$0xff]  ;;  %s5832_s4 = smov [#allocation2]  }
 0x820   :  { %s4268_s19 = sshll.u32 %s5832_s4, 4  ;;  %s4269_s19 = int_to_ptr.vmem [resolvable:$true] %s4268_s19 }
 0x821   :  { %s5805_s20 = scalar_lea.vmem %s4269_s19, 256  ;;  %p5810_p1 = scmp.lt.s32.totalorder %s4269_s19, %s4269_s19 }
 0x822   :  { %p5806_p0 = scmp.ne.s32.totalorder %s4269_s19, %s5805_s20  ;;  %p5811_p2 = scmp.lt.s32.totalorder %s5805_s20, %s5805_s20 }
 0x823   :  { %3121 = vadd.xlane.f32.xlu0 %v3120_v26 }
 0x824   :  { %p5812_p3 = por %p5811_p2, %p5810_p1 }
 0x826   :  { %p5813_p4 = pnand %p5812_p3, %p5806_p0 }
 0x839   :  { %3145 = vrot.lane.b32.xlu0 %v3113_v0, %s5831_s27  ;;  %v5628_v0 = vpack.c.bf16 %v3270_v36, %v3263_v21 }
 0x83d   :  { %3705 = vrot.lane.b32.xlu0 %v40_v58, %s5831_s27 }
 0x841   :  { %3709 = vrot.lane.b32.xlu0 %v42_v15, %s5831_s27 }
 0x845   :  { %3714 = vrot.lane.b32.xlu0 %v6509_v5, %s5831_s27 }
 0x88d   :  { %v3148_v35 = vpop.permute.xlu1 %3147 }
 0x88e   :  { %v3152_v46 = vmul.f32 %v5804_v39, %v3148_v35 }
 0x8ac   :  { %v3119_v8 = vpop.xlane.xlu0 %3118 }
 0x8ad   :  { %v3123_v19 = vmul.f32 0.032258064, %v3119_v8 }
 0x8af   :  { %5794 = vrsqrt.f32 %v3123_v19  ;;  %vm3127_vm6 = vcmp.eq.f32.partialorder %v3123_v19, inf  ;;  %v3130_v47 = vand.u32 2147483648, %v3123_v19  ;;  %vm3129_vm7 = vcmp.eq.f32.partialorder %v3123_v19, 0.0 }
 0x8b0   :  { %v3122_v14 = vpop.xlane.xlu0 %3121 }
 0x8b1   :  { %v3124_v24 = vmul.f32 0.032258064, %v3122_v14 }
 0x8b3   :  { %5796 = vrsqrt.f32 %v3124_v24  ;;  %vm3134_vm8 = vcmp.eq.f32.partialorder %v3124_v24, inf  ;;  %v3137_v51 = vand.u32 2147483648, %v3124_v24  ;;  %vm3136_vm9 = vcmp.eq.f32.partialorder %v3124_v24, 0.0 }
 0x8b4   :  { %v3146_v50 = vpop.permute.xlu0 %3145 }
 0x8b5   :  { %v3151_v44 = vmul.f32 %v5804_v39, %v3146_v50 }
 0x8b8   :  { %v3706_v56 = vpop.permute.xlu0 %3705 }
 0x8b9   :  { %v5795_v42 = vpop.eup %5794  ;;  %v3723_v26 = vsel %vm1334_vm5, %v3706_v56, 0 }
 0x8ba   :  { %v3126_v30 = vmul.f32 %v5795_v42, %v3123_v19  ;;  %v3732_v8 = vand.u32 4294901760, %v3723_v26 }
 0x8bc   :  { %v3128_v49 = vsel %vm3127_vm6, %v3123_v19, %v3126_v30  ;;  %v6514_v19 = vsub.f32 %v3723_v26, %v3732_v8  ;;  %v3710_v14 = vpop.permute.xlu0 %3709 }
 0x8bd   :  { %v5797_v34 = vpop.eup %5796  ;;  %v3131_v4 = vsel %vm3129_vm7, %v3130_v47, %v3128_v49 }
 0x8be   :  { %v3133_v11 = vmul.f32 %v5797_v34, %v3124_v24  ;;  %v3139_v48 = vadd.f32 1e-06, %v3131_v4 }
 0x8c0   :  { %v3135_v17 = vsel %vm3134_vm8, %v3124_v24, %v3133_v11  ;;  %5798 = vrcp.f32 %v3139_v48  ;;  %v3727_v24 = vsel %vm1334_vm5, %v3710_v14, 0 }
 0x8c1   :  { %v3138_v31 = vsel %vm3136_vm9, %v3137_v51, %v3135_v17  ;;  %v3738_v30 = vand.u32 4294901760, %v3727_v24 }
 0x8c2   :  { %v3140_v32 = vadd.f32 1e-06, %v3138_v31 }
 0x8c3   :  { %v6518_v34 = vsub.f32 %v3727_v24, %v3738_v30 }
 0x8c4   :  { %5800 = vrcp.f32 %v3140_v32 }
 0x8ca   :  { %v5799_v53 = vpop.eup %5798 }
 0x8cb   :  { %v3153_v62 = vmul.f32 %v5799_v53, %v3151_v44 }
 0x8cd   :  { %v3155_v16 = vadd.f32 %v3153_v62, %v5993_v12 }
 0x8ce   :  { %v5801_v22 = vpop.eup %5800 }
 0x8cf   :  { %3163 = vrot.lane.b32.xlu1 %v3155_v16, %s5831_s27  ;;  %v3154_v61 = vmul.f32 %v5801_v22, %v3152_v46  ;;  %v3823_v16 = vand.u32 4294901760, %v6514_v19  ;;  %v3837_v22 = vand.u32 4294901760, %v6518_v34 }
 0x8d1   :  { %v3156_v28 = vadd.f32 %v3154_v61, %v5993_v12  ;;  %v5608_v12 = vpack.c.bf16 %v3286_v29, %v3279_v7  ;;  %v3824_v54 = vsub.f32 %v6514_v19, %v3823_v16  ;;  %v3838_v20 = vsub.f32 %v6518_v34, %v3837_v22 }
 0x8d3   :  { %3165 = vrot.lane.b32.xlu1 %v3156_v28, %s5831_s27  ;;  %v3825_v36 = vand.u32 4294901760, %v3824_v54  ;;  %v3839_v25 = vand.u32 4294901760, %v3838_v20 }
 0x8d7   :  { %3707 = vrot.lane.b32.xlu1 %v41_v45, %s5831_s27 }
 0x8db   :  { %3711 = vrot.lane.b32.xlu1 %v43_v55, %s5831_s27 }
 0x941   :  { %v3164_v42 = vpop.permute.xlu1 %3163 }
 0x942   :  { %v3167_v47 = vsel %vm44_vm0, %v3164_v42, 0 }
 0x943   :  { %v3240_v49 = vand.u32 4294901760, %v3167_v47 }
 0x945   :  { %v3241_v4 = vsub.f32 %v3167_v47, %v3240_v49  ;;  %v3166_v11 = vpop.permute.xlu1 %3165 }
 0x946   :  { %v3169_v48 = vsel %vm44_vm0, %v3166_v11, 0 }
 0x947   :  { %v3242_v51 = vand.u32 4294901760, %v3241_v4  ;;  %v3250_v17 = vand.u32 4294901760, %v3169_v48 }
 0x949   :  { %v3251_v31 = vsub.f32 %v3169_v48, %v3250_v17  ;;  %v3243_v32 = vsub.f32 %v3241_v4, %v3242_v51  ;;  %v3708_v50 = vpop.permute.xlu1 %3707 }
 0x94a   :  { %v3725_v58 = vsel %vm1334_vm5, %v3708_v50, 0 }
 0x94b   :  { %v3252_v45 = vand.u32 4294901760, %v3251_v31  ;;  %v3244_v35 = vand.u32 4294901760, %v3243_v32  ;;  %v3735_v39 = vand.u32 4294901760, %v3725_v58 }
 0x94d   :  { %v3253_v44 = vsub.f32 %v3251_v31, %v3252_v45  ;;  %5088 = vmatprep.mubr.f32.mxu0 %v3244_v35  ;;  %v6522_v60 = vsub.f32 %v3725_v58, %v3735_v39  ;;  %v6524_v43 = vpack.c.bf16 %v3735_v39, %v3732_v8  ;;  %v3712_v53 = vpop.permute.xlu1 %3711 }
 0x94e   :  { %v3729_v62 = vsel %vm1334_vm5, %v3712_v53, 0 }
 0x94f   :  { %v3254_v52 = vand.u32 4294901760, %v3253_v44  ;;  %5645 = vmatprep.subr.bf16.mxu1 %v6524_v43  ;;  %v3741_v41 = vand.u32 4294901760, %v3729_v62  ;;  %v3830_v55 = vand.u32 4294901760, %v6522_v60 }
 0x950   :  { %5647 = vmatpush3.bf16.xpose.msra.mxu1 %v6524_v43 }
 0x951   :  { %5089 = vmatmul.mubr.f32.vlgmr.msra.gmra.mrb[8].mxu0 %v3254_v52  ;;  %v3843_v46 = vsub.f32 %v3729_v62, %v3741_v41  ;;  %v6529_v15 = vpack.c.bf16 %v3741_v41, %v3738_v30  ;;  %v3831_v38 = vsub.f32 %v6522_v60, %v3830_v55  ;;  %v5676_v42 = vpack.c.bf16 %v3830_v55, %v3823_v16 }
 0x952   :  { %5607 = vmatpush3.bf16.msra.mxu0 %v5604_v18  ;;  %5099 = vmatprep.mubr.f32.mxu0 %v3240_v49 }
 0x953   :  { %5609 = vmatprep.subr.bf16.mxu0 %v5608_v12  ;;  %5649 = vmatprep.subr.bf16.mxu1 %v6529_v15  ;;  %v3844_v21 = vand.u32 4294901760, %v3843_v46  ;;  %v3832_v61 = vand.u32 4294901760, %v3831_v38 }
 0x955   :  { %v3845_v9 = vsub.f32 %v3843_v46, %v3844_v21  ;;  %v5680_v28 = vpack.c.bf16 %v3844_v21, %v3837_v22 }
 0x956   :  { %5611 = vmatpush3.bf16.msra.mxu0 %v5608_v12 }
 0x957   :  { %5613 = vmatprep.subr.bf16.mxu0 %v5612_v13  ;;  %v3846_v27 = vand.u32 4294901760, %v3845_v9 }
 0x958   :  { %5651 = vmatpush3.bf16.xpose.msra.mxu1 %v6529_v15 }
 0x959   :  { %5100 = vmatmul.mubr.f32.vlgmr.msra.gmra.mrb[8].mxu0 %v3250_v17  ;;  %v5656_v57 = vpack.c.bf16 %v3846_v27, %v3839_v25 }
 0x95a   :  { %5615 = vmatpush3.bf16.msra.mxu0 %v5612_v13  ;;  %5110 = vmatprep.mubr.f32.mxu0 %v3241_v4 }
 0x95b   :  { %5617 = vmatprep.subr.bf16.mxu0 %v5616_v37 }
 0x95e   :  { %5619 = vmatpush3.bf16.msra.mxu0 %v5616_v37 }
 0x95f   :  { %5621 = vmatprep.subr.bf16.mxu0 %v6485_v40 }
 0x961   :  { %5111 = vmatmul.mubr.f32.vlgmr.msra.gmra.mrb[8].mxu0 %v3251_v31 }
 0x962   :  { %5623 = vmatpush3.bf16.msra.mxu0 %v6485_v40  ;;  %5121 = vmatprep.mubr.f32.mxu0 %v3242_v51 }
 0x963   :  { %5625 = vmatprep.subr.bf16.mxu0 %v6498_v6 }
 0x966   :  { %5627 = vmatpush3.bf16.msra.mxu0 %v6498_v6 }
 0x967   :  { %5629 = vmatprep.subr.bf16.mxu0 %v5628_v0 }
 0x969   :  { %5122 = vmatmul.mubr.f32.vlgmr.msra.gmra.mrb[8].mxu0 %v3252_v45 }
 0x96a   :  { %5631 = vmatpush3.bf16.msra.mxu0 %v5628_v0  ;;  %5132 = vmatprep.mubr.f32.mxu0 %v3240_v49 }
 0x96b   :  { %5633 = vmatprep.subr.bf16.mxu0 %v5632_v1 }
 0x96e   :  { %5635 = vmatpush3.bf16.msra.mxu0 %v5632_v1 }
 0x96f   :  { %5637 = vmatprep.subr.bf16.mxu0 %v6485_v40 }
 0x971   :  { %5133 = vmatmul.mubr.f32.vlgmr.msra.gmra.mrb[8].mxu0 %v3250_v17 }
 0x972   :  { %5639 = vmatpush3.bf16.msra.mxu0 %v6485_v40  ;;  %5143 = vmatprep.mubr.f32.mxu0 %v3240_v49  ;;  %v5652_v40 = vpack.c.bf16 %v3832_v61, %v3825_v36 }
 0x973   :  { %5641 = vmatprep.subr.bf16.mxu0 %v6498_v6 }
 0x974   :  { %5653 = vmatprep.subr.bf16.mxu1 %v5652_v40 }
 0x976   :  { %5643 = vmatpush3.bf16.msra.mxu0 %v6498_v6  ;;  %v5664_v6 = vpack.c.bf16 %v3843_v46, %v6518_v34 }
 0x979   :  { %5144 = vmatmul.mubr.f32.vlgmr.msra.gmra.mrb[8].mxu0 %v3250_v17 }
 0xa4c   :  { %v5145_v59 = vpop.f32.mrb[8].mxu0 }
 0xa4d   :  { %v5702_v33 = vadd.f32 %v5145_v59, %v6509_v5  ;;  %v3689_v3 = vpop.f32.mrb[9].mxu0 }
 0xa4e   :  { %v5703_v23 = vadd.f32 %v6509_v5, %v3689_v3  ;;  %v5660_v5 = vpack.c.bf16 %v6522_v60, %v6514_v19  ;;  %v3715_v19 = vpop.permute.xlu0 %3714 }
 0xa4f   :  { %v3700_v18 = vmax.f32 %v5702_v33, 0.0 }
 0xa50   :  { %v3699_v10 = vmax.f32 %v5703_v23, 0.0 }
 0xa51   :  { %v3721_v7 = vsel %vm1334_vm5, %v3700_v18, 0 }
 0xa52   :  { %v3810_v29 = vand.u32 4294901760, %v3721_v7  ;;  %v3718_v13 = vsel %vm1334_vm5, %v3699_v10, 0 }
 0xa53   :  { %v3800_v12 = vand.u32 4294901760, %v3718_v13 }
 0xa54   :  { %v3811_v37 = vsub.f32 %v3721_v7, %v3810_v29 }
 0xa55   :  { %v3801_v0 = vsub.f32 %v3718_v13, %v3800_v12 }
 0xa56   :  { %v3812_v1 = vand.u32 4294901760, %v3811_v37 }
 0xa57   :  { %v3802_v56 = vand.u32 4294901760, %v3801_v0 }
 0xa58   :  { %v3813_v26 = vsub.f32 %v3811_v37, %v3812_v1 }
 0xa59   :  { %v3803_v8 = vsub.f32 %v3801_v0, %v3802_v56 }
 0xa5a   :  { %v3814_v24 = vand.u32 4294901760, %v3813_v26 }
 0xa5b   :  { %v3804_v14 = vand.u32 4294901760, %v3803_v8 }
 0xa5d   :  { %5154 = vmatprep.mubr.f32.mxu1 %v3804_v14 }
 0xa5e   :  { %5155 = vmatmul.mubr.f32.vlgmr.msra.gmra.mrb[6].mxu1 %v3814_v24 }
 0xa5f   :  { %5655 = vmatpush3.bf16.xpose.msra.mxu1 %v5652_v40  ;;  %5165 = vmatprep.mubr.f32.mxu1 %v3800_v12 }
 0xa60   :  { %5657 = vmatprep.subr.bf16.mxu1 %v5656_v57 }
 0xa67   :  { %5659 = vmatpush3.bf16.xpose.msra.mxu1 %v5656_v57 }
 0xa68   :  { %5661 = vmatprep.subr.bf16.mxu1 %v5660_v5 }
 0xa6e   :  { %5166 = vmatmul.mubr.f32.vlgmr.msra.gmra.mrb[6].mxu1 %v3810_v29 }
 0xa6f   :  { %5663 = vmatpush3.bf16.xpose.msra.mxu1 %v5660_v5  ;;  %5176 = vmatprep.mubr.f32.mxu1 %v3801_v0 }
 0xa70   :  { %5665 = vmatprep.subr.bf16.mxu1 %v5664_v6 }
 0xa77   :  { %5667 = vmatpush3.bf16.xpose.msra.mxu1 %v5664_v6 }
 0xa78   :  { %5669 = vmatprep.subr.bf16.mxu1 %v6524_v43 }
 0xa7e   :  { %5177 = vmatmul.mubr.f32.vlgmr.msra.gmra.mrb[6].mxu1 %v3811_v37 }
 0xa7f   :  { %5671 = vmatpush3.bf16.xpose.msra.mxu1 %v6524_v43  ;;  %5187 = vmatprep.mubr.f32.mxu1 %v3802_v56 }
 0xa80   :  { %5673 = vmatprep.subr.bf16.mxu1 %v6529_v15 }
 0xa87   :  { %5675 = vmatpush3.bf16.xpose.msra.mxu1 %v6529_v15 }
 0xa88   :  { %5677 = vmatprep.subr.bf16.mxu1 %v5676_v42 }
 0xa8e   :  { %5188 = vmatmul.mubr.f32.vlgmr.msra.gmra.mrb[6].mxu1 %v3812_v1 }
 0xa8f   :  { %5679 = vmatpush3.bf16.xpose.msra.mxu1 %v5676_v42  ;;  %5198 = vmatprep.mubr.f32.mxu1 %v3800_v12 }
 0xa90   :  { %5681 = vmatprep.subr.bf16.mxu1 %v5680_v28 }
 0xa97   :  { %5683 = vmatpush3.bf16.xpose.msra.mxu1 %v5680_v28 }
 0xa98   :  { %5685 = vmatprep.subr.bf16.mxu1 %v6524_v43 }
 0xa9e   :  { %5199 = vmatmul.mubr.f32.vlgmr.msra.gmra.mrb[6].mxu1 %v3810_v29 }
 0xa9f   :  { %5687 = vmatpush3.bf16.xpose.msra.mxu1 %v6524_v43  ;;  %5209 = vmatprep.mubr.f32.mxu1 %v3800_v12 }
 0xaa0   :  { %5689 = vmatprep.subr.bf16.mxu1 %v6529_v15 }
 0xaa7   :  { %5691 = vmatpush3.bf16.xpose.msra.mxu1 %v6529_v15 }
 0xaae   :  { %5210 = vmatmul.mubr.f32.vlgmr.msra.gmra.mrb[6].mxu1 %v3810_v29 }
 0xb81   :  { %v5211_v30 = vpop.f32.mrb[6].mxu1 }
 0xb82   :  { %v5704_v47 = vadd.f32 %v5211_v30, %v3715_v19  ;;  %v4249_v49 = vpop.f32.mrb[7].mxu1 }
 0xb83   :  { %v5705_v34 = vadd.f32 %v4249_v49, %v3715_v19 }
 0xb84   :  { %v4260_v4 = vadd.f32 %v5704_v47, %v6458_v63 }
 0xb85   :  { %v4259_v11 = vadd.f32 %v5705_v34, %v6463_v2 }
 0xb86   :  { %4262 = vst.msk [vmem:[#allocation2 + $0x8] sm:$0xff] %vm44_vm0, %v4260_v4 }
 0xb87   :  { %4261 = vst.msk [vmem:[#allocation2] sm:$0xff] %vm44_vm0, %v4259_v11 }
 0xb88   :  { %5816 = shalt.err (!%p5813_p4)
}
 0xb89   :  { %s5817_s23 = scalar_lea.hbm %s6583_s5, 256 }
 0xb8a   :  { %p5818_p5 = scmp.ne.s32.totalorder %s6583_s5, %s5817_s23  ;;  %p5821_p6 = scmp.lt.u32.totalorder %s5817_s23, %s6583_s5 }
 0xb8c   :  { %p5823_p7 = pnand %p5821_p6, %p5818_p5 }
 0xb8e   :  { %5826 = shalt.err (!%p5823_p7)
}
 0xb8f   :  { %s5833_s24 = smov 128   ;;  %s5834_s28 = smov 8  }
 0xb90   :  { %4274 = dma.vmem_to_hbm [thread:$0]  %s4269_s19, 256, %s6583_s5, [#allocation3], %s5833_s24, %s5833_s24, %s5834_s28  }
 0xb91   :  { %5827 = dma.done.wait [#allocation3], 256  }
 0xb92   :  { %5828 = vsyncadd [#allocation3], 4294967040 }
 0xb93   :  { %4278 = vsyncpa [#allocation3], 1 }

</bundles_post_ra>
